<compile_context>
chip_gen: v7x
topology: tpu7x:2x2x1
jax: 0.10.0
libtpu: 0.0.40
codegen_flags: <defaults>
</compile_context>

<pallas_src>
import math
import functools

import jax
import jax.numpy as jnp
from jax import lax
from jax.experimental import pallas as pl
from jax.experimental.pallas import tpu as pltpu


# ---------------------------------------------------------------------------
# Fused Pallas kernel (one grid step == one batch block of Bc sequences)
# ---------------------------------------------------------------------------
def sakt_kernel(idx_ref, item_emb_ref, skill_emb_ref,
                win_ref, wq_all_ref, wkv_ref, bkv_ref, wout_ref, bias_ref,
                out_ref, *, num_layers, num_heads):
    f32 = jnp.float32
    _, Bc, S, _ = idx_ref.shape          # packed ints: (5, Bc, S, 1)
    Nc = Bc * S
    E = win_ref.shape[1]
    L = num_layers
    H = num_heads
    hs = E // H
    scale = 1.0 / math.sqrt(hs)

    # --- unpack the packed bias row: [bin | bq (all layers) | bout] -----------
    bin_v = bias_ref[:, :E]                          # (1, E)
    bq_all = bias_ref[:, E:E + L * E]                # (1, L*E)
    bout = bias_ref[:, E + L * E:E + L * E + 1]      # (1, 1)

    # --- embedding lookups: ONE one-hot matmul per table (interactions + queries) ---
    def lookup2(in_idx, q_idx, emb_ref):
        V = emb_ref.shape[0]
        stacked = jnp.concatenate([in_idx, q_idx], axis=0)          # (2*Bc, S, 1) int32
        iota = lax.broadcasted_iota(jnp.int32, (2 * Bc, S, V), 2)
        onehot = (stacked == iota).astype(f32).reshape(2 * Nc, V)   # layout no-op (S%8==0)
        emb = jnp.dot(onehot, emb_ref[...], preferred_element_type=f32)  # (2*Nc, E//2)
        return emb[:Nc], emb[Nc:]                                   # interactions, queries

    ii, iq = lookup2(idx_ref[0], idx_ref[3], item_emb_ref)
    si, sq = lookup2(idx_ref[1], idx_ref[4], skill_emb_ref)

    lab = idx_ref[2].astype(f32).reshape(Nc, 1)                     # labels (0/1)
    x_in = jnp.concatenate([ii * lab, si * lab,
                            ii * (1.0 - lab), si * (1.0 - lab)], axis=-1)   # (Nc, 2E)
    query = jnp.concatenate([iq, sq], axis=-1)                               # (Nc, E)

    # inputs = relu(lin_in(x_in))
    inputs = jnp.maximum(
        jnp.dot(x_in, win_ref[...], preferred_element_type=f32) + bin_v, 0.0)

    # Q projections for ALL layers fused into one matmul (query is layer-invariant).
    q_all = jnp.dot(query, wq_all_ref[...], preferred_element_type=f32) + bq_all  # (Nc, L*E)

    # Single (S, S) causal additive mask; broadcast over the (head, batch) dim.
    r = lax.broadcasted_iota(jnp.int32, (S, S), 0)
    c = lax.broadcasted_iota(jnp.int32, (S, S), 1)
    mask_add = jnp.where(c > r, jnp.float32(-1e9), jnp.float32(0.0))

    def split_heads(x):   # (Nc, E) -> (H*Bc, S, hs); batch ordering = (head, batch)
        x3 = x.reshape(Bc, S, E)
        return jnp.concatenate([x3[:, :, h * hs:(h + 1) * hs] for h in range(H)], axis=0)

    def merge_heads(ctx):  # (H*Bc, S, hs) -> (Nc, E), head-major lanes (== torch .view)
        return jnp.concatenate([ctx[h * Bc:(h + 1) * Bc] for h in range(H)],
                               axis=-1).reshape(Nc, E)

    def mha(kv_src, layer):
        # fused K|V projection: one (Nc, E) @ (E, 2E) matmul per layer
        kv = jnp.dot(kv_src, wkv_ref[layer], preferred_element_type=f32) + bkv_ref[layer]
        k = split_heads(kv[:, :E])
        v = split_heads(kv[:, E:])
        q = split_heads(q_all[:, layer * E:(layer + 1) * E])

        # batched over (head, batch): (HB, S, hs) x (HB, S, hs) -> (HB, S, S)
        scores = lax.dot_general(q, k, (((2,), (2,)), ((0,), (0,))),
                                 preferred_element_type=f32) * scale
        scores = scores + mask_add[None]
        scores = scores - jnp.max(scores, axis=-1, keepdims=True)
        p = jnp.exp(scores)
        p = p * pl.reciprocal(jnp.sum(p, axis=-1, keepdims=True), approx=True)

        ctx = lax.dot_general(p, v, (((2,), (1,)), ((0,), (0,))),
                              preferred_element_type=f32)           # (HB, S, hs)
        return merge_heads(ctx)

    # layer 0: outputs = attn(query, inputs, inputs)   (dropout == identity)
    outputs = mha(inputs, 0)
    # layers 1..L-1: outputs = outputs + relu(attn(query, outputs, outputs))
    for layer in range(1, L):
        outputs = outputs + jnp.maximum(mha(outputs, layer), 0.0)

    # lin_out as a single matvec producing a lane-dense (1, Nc) row:
    row = lax.dot_general(wout_ref[...], outputs, (((1,), (1,)), ((), ())),
                          preferred_element_type=f32) + bout        # (1, Nc)
    out_ref[0] = row


# ---------------------------------------------------------------------------
# Wrapper: packs operands, fuses weights, calls pallas_call.
# ---------------------------------------------------------------------------
@functools.partial(jax.jit, static_argnames=("num_layers", "num_heads"))
def sakt_forward_pallas(item_inputs, skill_inputs, label_inputs, item_ids, skill_ids,
                        item_emb, skill_emb, params, *, num_layers, num_heads):
    B, S = item_inputs.shape
    E = params["win_t"].shape[1]
    L, H = num_layers, num_heads
    assert S % 8 == 0, "in-kernel (B,S,.) <-> (B*S,.) reshapes require S % 8 == 0"

    # Two batch blocks -> second TensorCore on v7x; single block if B is odd / 1.
    G = 2 if (B % 2 == 0 and B >= 2) else 1
    Bc = B // G

    # Pack the five integer/label inputs into one operand (trailing singleton keeps
    # the index values lane-broadcastable without a lane<->sublane relayout in-kernel).
    idx = jnp.stack([item_inputs, skill_inputs, label_inputs, item_ids, skill_ids],
                    axis=0).astype(jnp.int32)[..., None]            # (5, B, S, 1)

    # Fused weights (one-time, plain XLA):
    wq_all = params["wq_t"].transpose(1, 0, 2).reshape(E, L * E)    # all layers' Q
    bq_all = params["bq"].reshape(1, L * E)
    wkv = jnp.concatenate([params["wk_t"], params["wv_t"]], axis=2)  # (L, E, 2E)
    bkv = jnp.concatenate([params["bk"], params["bv"]], axis=2)      # (L, 1, 2E)
    wout_row = params["wout_t"].reshape(1, E)
    bias_misc = jnp.concatenate([params["bin"], bq_all, params["bout"]], axis=1)  # (1, E+L*E+1)

    operands = (idx, item_emb, skill_emb, params["win_t"], wq_all, wkv, bkv,
                wout_row, bias_misc)

    def const_spec(shape):
        n = len(shape)
        return pl.BlockSpec(tuple(shape), lambda g, _n=n: (0,) * _n)

    in_specs = [pl.BlockSpec((5, Bc, S, 1), lambda g: (0, g, 0, 0))]
    in_specs += [const_spec(x.shape) for x in operands[1:]]

    kernel = functools.partial(sakt_kernel, num_layers=L, num_heads=H)

    out = pl.pallas_call(
        kernel,
        out_shape=jax.ShapeDtypeStruct((G, 1, Bc * S), jnp.float32),
        grid_spec=pltpu.PrefetchScalarGridSpec(
            num_scalar_prefetch=0,
            grid=(G,),
            in_specs=in_specs,
            out_specs=pl.BlockSpec((1, 1, Bc * S), lambda g: (g, 0, 0)),
        ),
        compiler_params=pltpu.CompilerParams(
            dimension_semantics=("parallel",),
            vmem_limit_bytes=64 * 1024 * 1024,
        ),
    )(*operands)

    return out.reshape(B, S, 1)


# ---------------------------------------------------------------------------
# Pure-JAX reference mirroring the PyTorch forward (encode_pos=False, eval mode).
# ---------------------------------------------------------------------------
def reference_forward(item_inputs, skill_inputs, label_inputs, item_ids, skill_ids,
                      item_emb, skill_emb, params, *, num_layers, num_heads):
    E = params["win_t"].shape[1]
    H, hs = num_heads, E // num_heads
    B, S = item_inputs.shape

    ii = item_emb[item_inputs]
    si = skill_emb[skill_inputs]
    lab = label_inputs[..., None].astype(jnp.float32)
    x_in = jnp.concatenate([ii * lab, si * lab, ii * (1 - lab), si * (1 - lab)], -1)
    query = jnp.concatenate([item_emb[item_ids], skill_emb[skill_ids]], -1)

    inputs = jax.nn.relu(x_in @ params["win_t"] + params["bin"][0])
    future = jnp.arange(S)[None, :] > jnp.arange(S)[:, None]

    def mha(q_src, kv_src, l):
        q = q_src @ params["wq_t"][l] + params["bq"][l, 0]
        k = kv_src @ params["wk_t"][l] + params["bk"][l, 0]
        v = kv_src @ params["wv_t"][l] + params["bv"][l, 0]
        q = q.reshape(B, S, H, hs).transpose(0, 2, 1, 3)
        k = k.reshape(B, S, H, hs).transpose(0, 2, 1, 3)
        v = v.reshape(B, S, H, hs).transpose(0, 2, 1, 3)
        sc = jnp.einsum("bhqd,bhkd->bhqk", q, k) / math.sqrt(hs)
        sc = jnp.where(future[None, None], -1e9, sc)
        p = jax.nn.softmax(sc, axis=-1)
        o = jnp.einsum("bhqk,bhkd->bhqd", p, v)
        return o.transpose(0, 2, 1, 3).reshape(B, S, E)

    outputs = mha(query, inputs, 0)
    for l in range(1, num_layers):
        outputs = outputs + jax.nn.relu(mha(query, outputs, l))
    return outputs @ params["wout_t"] + params["bout"][0]


if __name__ == "__main__":
    # model config (small, consistent with SAKT.__init__)
    num_items, num_skills = 20, 12
    embed_size = 32          # E
    num_attn_layers = 2      # L
    num_heads = 4            # H
    B, S = 2, 8

    key = jax.random.PRNGKey(0)
    ks = jax.random.split(key, 16)
    E, L = embed_size, num_attn_layers
    half = E // 2

    # Embedding tables (row 0 = padding_idx -> zeros)
    item_emb = 0.1 * jax.random.normal(ks[0], (num_items + 1, half), jnp.float32)
    item_emb = item_emb.at[0].set(0.0)
    skill_emb = 0.1 * jax.random.normal(ks[1], (num_skills + 1, half), jnp.float32)
    skill_emb = skill_emb.at[0].set(0.0)

    # Linear layers (stored pre-transposed as (in, out))
    params = {
        "win_t": 0.1 * jax.random.normal(ks[2], (2 * E, E), jnp.float32),
        "bin":   0.1 * jax.random.normal(ks[3], (1, E), jnp.float32),
        "wq_t":  0.1 * jax.random.normal(ks[4], (L, E, E), jnp.float32),
        "bq":    0.1 * jax.random.normal(ks[5], (L, 1, E), jnp.float32),
        "wk_t":  0.1 * jax.random.normal(ks[6], (L, E, E), jnp.float32),
        "bk":    0.1 * jax.random.normal(ks[7], (L, 1, E), jnp.float32),
        "wv_t":  0.1 * jax.random.normal(ks[8], (L, E, E), jnp.float32),
        "bv":    0.1 * jax.random.normal(ks[9], (L, 1, E), jnp.float32),
        "wout_t": 0.1 * jax.random.normal(ks[10], (E, 1), jnp.float32),
        "bout":  0.1 * jax.random.normal(ks[11], (1, 1), jnp.float32),
    }

    # Deterministic integer inputs
    item_inputs = jax.random.randint(ks[12], (B, S), 0, num_items + 1)
    skill_inputs = jax.random.randint(ks[13], (B, S), 0, num_skills + 1)
    label_inputs = jax.random.randint(ks[14], (B, S), 0, 2)
    item_ids = jax.random.randint(ks[15], (B, S), 1, num_items + 1)
    skill_ids = jax.random.randint(ks[12], (B, S), 1, num_skills + 1)

    out = sakt_forward_pallas(item_inputs, skill_inputs, label_inputs,
                              item_ids, skill_ids, item_emb, skill_emb, params,
                              num_layers=num_attn_layers, num_heads=num_heads)
    out = jax.block_until_ready(out)

    ref = reference_forward(item_inputs, skill_inputs, label_inputs,
                            item_ids, skill_ids, item_emb, skill_emb, params,
                            num_layers=num_attn_layers, num_heads=num_heads)

    assert out.shape == (B, S, 1)
    # tolerance loosened slightly (1e-3) to allow the approx-reciprocal softmax denom
    assert jnp.allclose(out, ref, atol=1e-3, rtol=1e-3), "Pallas output mismatch vs reference"

    print("KERNEL_OK")
</pallas_src>

<mosaic_0001>
module attributes {stable_mosaic.version = 11 : i64} {
  func.func @sakt_kernel(%arg0: i32, %arg1: memref<5x1x8x1xi32, #tpu.memory_space<vmem>>, %arg2: memref<21x16xf32, #tpu.memory_space<vmem>>, %arg3: memref<13x16xf32, #tpu.memory_space<vmem>>, %arg4: memref<64x32xf32, #tpu.memory_space<vmem>>, %arg5: memref<32x64xf32, #tpu.memory_space<vmem>>, %arg6: memref<2x32x64xf32, #tpu.memory_space<vmem>>, %arg7: memref<2x1x64xf32, #tpu.memory_space<vmem>>, %arg8: memref<1x32xf32, #tpu.memory_space<vmem>>, %arg9: memref<1x97xf32, #tpu.memory_space<vmem>>, %arg10: memref<1x1x8xf32, #tpu.memory_space<vmem>>) attributes {dimension_semantics = [#tpu.dimension_semantics<parallel>], iteration_bounds = array<i64: 2>, scalar_prefetch = 0 : i64, scratch_operands = 0 : i64, tpu.core_type = #tpu.core_type<tc>, window_params = [{transform_indices = @transform_0, window_bounds = array<i64: 5, 1, 8, 1>}, {pipeline_mode = #tpu.pipeline_mode<synchronous>, transform_indices = @transform_1, window_bounds = array<i64: 21, 16>}, {pipeline_mode = #tpu.pipeline_mode<synchronous>, transform_indices = @transform_2, window_bounds = array<i64: 13, 16>}, {pipeline_mode = #tpu.pipeline_mode<synchronous>, transform_indices = @transform_3, window_bounds = array<i64: 64, 32>}, {pipeline_mode = #tpu.pipeline_mode<synchronous>, transform_indices = @transform_4, window_bounds = array<i64: 32, 64>}, {pipeline_mode = #tpu.pipeline_mode<synchronous>, transform_indices = @transform_5, window_bounds = array<i64: 2, 32, 64>}, {pipeline_mode = #tpu.pipeline_mode<synchronous>, transform_indices = @transform_6, window_bounds = array<i64: 2, 1, 64>}, {pipeline_mode = #tpu.pipeline_mode<synchronous>, transform_indices = @transform_7, window_bounds = array<i64: 1, 32>}, {pipeline_mode = #tpu.pipeline_mode<synchronous>, transform_indices = @transform_8, window_bounds = array<i64: 1, 97>}, {transform_indices = @transform_9, window_bounds = array<i64: 1, 1, 8>}]} {
    %c0 = arith.constant 0 : index
    %c0_0 = arith.constant 0 : index
    %0 = vector.load %arg9[%c0, %c0_0] : memref<1x97xf32, #tpu.memory_space<vmem>>, vector<1x32xf32>
    %c0_1 = arith.constant 0 : index
    %c32 = arith.constant 32 : index
    %1 = vector.load %arg9[%c0_1, %c32] : memref<1x97xf32, #tpu.memory_space<vmem>>, vector<1x64xf32>
    %c0_2 = arith.constant 0 : index
    %c96 = arith.constant 96 : index
    %2 = vector.load %arg9[%c0_2, %c96] : memref<1x97xf32, #tpu.memory_space<vmem>>, vector<1x1xf32>
    %c0_3 = arith.constant 0 : index
    %c0_4 = arith.constant 0 : index
    %c0_5 = arith.constant 0 : index
    %c0_6 = arith.constant 0 : index
    %3 = vector.load %arg1[%c0_3, %c0_4, %c0_5, %c0_6] : memref<5x1x8x1xi32, #tpu.memory_space<vmem>>, vector<1x1x8x1xi32>
    %4 = vector.shape_cast %3 : vector<1x1x8x1xi32> to vector<1x8x1xi32>
    %c3 = arith.constant 3 : index
    %c0_7 = arith.constant 0 : index
    %c0_8 = arith.constant 0 : index
    %c0_9 = arith.constant 0 : index
    %5 = vector.load %arg1[%c3, %c0_7, %c0_8, %c0_9] : memref<5x1x8x1xi32, #tpu.memory_space<vmem>>, vector<1x1x8x1xi32>
    %6 = vector.shape_cast %5 : vector<1x1x8x1xi32> to vector<1x8x1xi32>
    %7 = tpu.concatenate %4, %6 in 0 : vector<1x8x1xi32>, vector<1x8x1xi32> -> vector<2x8x1xi32>
    %8 = tpu.iota {dimensions = array<i32: 2>} : vector<2x8x21xi32>
    %9 = vector.broadcast %7 : vector<2x8x1xi32> to vector<2x8x21xi32>
    %10 = arith.cmpi eq, %9, %8 : vector<2x8x21xi32>
    %11 = arith.extui %10 : vector<2x8x21xi1> to vector<2x8x21xi32>
    %12 = arith.sitofp %11 : vector<2x8x21xi32> to vector<2x8x21xf32>
    %13 = vector.shape_cast %12 : vector<2x8x21xf32> to vector<16x21xf32>
    %c0_10 = arith.constant 0 : index
    %c0_11 = arith.constant 0 : index
    %14 = vector.load %arg2[%c0_10, %c0_11] : memref<21x16xf32, #tpu.memory_space<vmem>>, vector<21x16xf32>
    %cst = arith.constant dense<0.000000e+00> : vector<16x16xf32>
    %15 = tpu.matmul %13, %14, %cst {dimension_numbers = #tpu.dot_dimension_numbers<[1], [0], [0], [1], [0, 0, 1, 1], [], []>} : vector<16x21xf32>, vector<21x16xf32>, vector<16x16xf32> -> vector<16x16xf32>
    %16 = vector.extract_strided_slice %15 {offsets = [0, 0], sizes = [8, 16], strides = [1, 1]} : vector<16x16xf32> to vector<8x16xf32>
    %17 = vector.extract_strided_slice %15 {offsets = [8, 0], sizes = [8, 16], strides = [1, 1]} : vector<16x16xf32> to vector<8x16xf32>
    %c1 = arith.constant 1 : index
    %c0_12 = arith.constant 0 : index
    %c0_13 = arith.constant 0 : index
    %c0_14 = arith.constant 0 : index
    %18 = vector.load %arg1[%c1, %c0_12, %c0_13, %c0_14] : memref<5x1x8x1xi32, #tpu.memory_space<vmem>>, vector<1x1x8x1xi32>
    %19 = vector.shape_cast %18 : vector<1x1x8x1xi32> to vector<1x8x1xi32>
    %c4 = arith.constant 4 : index
    %c0_15 = arith.constant 0 : index
    %c0_16 = arith.constant 0 : index
    %c0_17 = arith.constant 0 : index
    %20 = vector.load %arg1[%c4, %c0_15, %c0_16, %c0_17] : memref<5x1x8x1xi32, #tpu.memory_space<vmem>>, vector<1x1x8x1xi32>
    %21 = vector.shape_cast %20 : vector<1x1x8x1xi32> to vector<1x8x1xi32>
    %22 = tpu.concatenate %19, %21 in 0 : vector<1x8x1xi32>, vector<1x8x1xi32> -> vector<2x8x1xi32>
    %23 = tpu.iota {dimensions = array<i32: 2>} : vector<2x8x13xi32>
    %24 = vector.broadcast %22 : vector<2x8x1xi32> to vector<2x8x13xi32>
    %25 = arith.cmpi eq, %24, %23 : vector<2x8x13xi32>
    %26 = arith.extui %25 : vector<2x8x13xi1> to vector<2x8x13xi32>
    %27 = arith.sitofp %26 : vector<2x8x13xi32> to vector<2x8x13xf32>
    %28 = vector.shape_cast %27 : vector<2x8x13xf32> to vector<16x13xf32>
    %c0_18 = arith.constant 0 : index
    %c0_19 = arith.constant 0 : index
    %29 = vector.load %arg3[%c0_18, %c0_19] : memref<13x16xf32, #tpu.memory_space<vmem>>, vector<13x16xf32>
    %cst_20 = arith.constant dense<0.000000e+00> : vector<16x16xf32>
    %30 = tpu.matmul %28, %29, %cst_20 {dimension_numbers = #tpu.dot_dimension_numbers<[1], [0], [0], [1], [0, 0, 1, 1], [], []>} : vector<16x13xf32>, vector<13x16xf32>, vector<16x16xf32> -> vector<16x16xf32>
    %31 = vector.extract_strided_slice %30 {offsets = [0, 0], sizes = [8, 16], strides = [1, 1]} : vector<16x16xf32> to vector<8x16xf32>
    %32 = vector.extract_strided_slice %30 {offsets = [8, 0], sizes = [8, 16], strides = [1, 1]} : vector<16x16xf32> to vector<8x16xf32>
    %c2 = arith.constant 2 : index
    %c0_21 = arith.constant 0 : index
    %c0_22 = arith.constant 0 : index
    %c0_23 = arith.constant 0 : index
    %33 = vector.load %arg1[%c2, %c0_21, %c0_22, %c0_23] : memref<5x1x8x1xi32, #tpu.memory_space<vmem>>, vector<1x1x8x1xi32>
    %34 = vector.shape_cast %33 : vector<1x1x8x1xi32> to vector<1x8x1xi32>
    %35 = arith.sitofp %34 : vector<1x8x1xi32> to vector<1x8x1xf32>
    %36 = vector.shape_cast %35 : vector<1x8x1xf32> to vector<8x1xf32>
    %37 = vector.broadcast %36 : vector<8x1xf32> to vector<8x16xf32>
    %38 = arith.mulf %16, %37 : vector<8x16xf32>
    %39 = vector.broadcast %36 : vector<8x1xf32> to vector<8x16xf32>
    %40 = arith.mulf %31, %39 : vector<8x16xf32>
    %cst_24 = arith.constant 1.000000e+00 : f32
    %41 = vector.broadcast %cst_24 : f32 to vector<8x1xf32>
    %42 = arith.subf %41, %36 : vector<8x1xf32>
    %43 = vector.broadcast %42 : vector<8x1xf32> to vector<8x16xf32>
    %44 = arith.mulf %16, %43 : vector<8x16xf32>
    %cst_25 = arith.constant 1.000000e+00 : f32
    %45 = vector.broadcast %cst_25 : f32 to vector<8x1xf32>
    %46 = arith.subf %45, %36 : vector<8x1xf32>
    %47 = vector.broadcast %46 : vector<8x1xf32> to vector<8x16xf32>
    %48 = arith.mulf %31, %47 : vector<8x16xf32>
    %49 = tpu.concatenate %38, %40, %44, %48 in 1 : vector<8x16xf32>, vector<8x16xf32>, vector<8x16xf32>, vector<8x16xf32> -> vector<8x64xf32>
    %50 = tpu.concatenate %17, %32 in 1 : vector<8x16xf32>, vector<8x16xf32> -> vector<8x32xf32>
    %c0_26 = arith.constant 0 : index
    %c0_27 = arith.constant 0 : index
    %51 = vector.load %arg4[%c0_26, %c0_27] : memref<64x32xf32, #tpu.memory_space<vmem>>, vector<64x32xf32>
    %cst_28 = arith.constant dense<0.000000e+00> : vector<8x32xf32>
    %52 = tpu.matmul %49, %51, %cst_28 {dimension_numbers = #tpu.dot_dimension_numbers<[1], [0], [0], [1], [0, 0, 1, 1], [], []>} : vector<8x64xf32>, vector<64x32xf32>, vector<8x32xf32> -> vector<8x32xf32>
    %53 = vector.broadcast %0 : vector<1x32xf32> to vector<8x32xf32>
    %54 = arith.addf %52, %53 : vector<8x32xf32>
    %cst_29 = arith.constant 0.000000e+00 : f32
    %55 = vector.broadcast %cst_29 : f32 to vector<8x32xf32>
    %56 = arith.maximumf %54, %55 : vector<8x32xf32>
    %c0_30 = arith.constant 0 : index
    %c0_31 = arith.constant 0 : index
    %57 = vector.load %arg5[%c0_30, %c0_31] : memref<32x64xf32, #tpu.memory_space<vmem>>, vector<32x64xf32>
    %cst_32 = arith.constant dense<0.000000e+00> : vector<8x64xf32>
    %58 = tpu.matmul %50, %57, %cst_32 {dimension_numbers = #tpu.dot_dimension_numbers<[1], [0], [0], [1], [0, 0, 1, 1], [], []>} : vector<8x32xf32>, vector<32x64xf32>, vector<8x64xf32> -> vector<8x64xf32>
    %59 = vector.broadcast %1 : vector<1x64xf32> to vector<8x64xf32>
    %60 = arith.addf %58, %59 : vector<8x64xf32>
    %61 = tpu.iota {dimensions = array<i32: 0>} : vector<8x8xi32>
    %62 = tpu.iota {dimensions = array<i32: 1>} : vector<8x8xi32>
    %63 = arith.cmpi sgt, %62, %61 : vector<8x8xi32>
    %cst_33 = arith.constant -1.000000e+09 : f32
    %cst_34 = arith.constant 0.000000e+00 : f32
    %64 = vector.broadcast %cst_33 : f32 to vector<8x8xf32>
    %65 = vector.broadcast %cst_34 : f32 to vector<8x8xf32>
    %66 = arith.select %63, %64, %65 : vector<8x8xi1>, vector<8x8xf32>
    %c0_35 = arith.constant 0 : index
    %c0_36 = arith.constant 0 : index
    %c0_37 = arith.constant 0 : index
    %67 = vector.load %arg6[%c0_35, %c0_36, %c0_37] : memref<2x32x64xf32, #tpu.memory_space<vmem>>, vector<1x32x64xf32>
    %68 = vector.shape_cast %67 : vector<1x32x64xf32> to vector<32x64xf32>
    %cst_38 = arith.constant dense<0.000000e+00> : vector<8x64xf32>
    %69 = tpu.matmul %56, %68, %cst_38 {dimension_numbers = #tpu.dot_dimension_numbers<[1], [0], [0], [1], [0, 0, 1, 1], [], []>} : vector<8x32xf32>, vector<32x64xf32>, vector<8x64xf32> -> vector<8x64xf32>
    %c0_39 = arith.constant 0 : index
    %c0_40 = arith.constant 0 : index
    %c0_41 = arith.constant 0 : index
    %70 = vector.load %arg7[%c0_39, %c0_40, %c0_41] : memref<2x1x64xf32, #tpu.memory_space<vmem>>, vector<1x1x64xf32>
    %71 = vector.shape_cast %70 : vector<1x1x64xf32> to vector<1x64xf32>
    %72 = vector.broadcast %71 : vector<1x64xf32> to vector<8x64xf32>
    %73 = arith.addf %69, %72 : vector<8x64xf32>
    %74 = vector.extract_strided_slice %73 {offsets = [0, 0], sizes = [8, 32], strides = [1, 1]} : vector<8x64xf32> to vector<8x32xf32>
    %75 = vector.shape_cast %74 : vector<8x32xf32> to vector<1x8x32xf32>
    %76 = vector.extract_strided_slice %75 {offsets = [0, 0, 0], sizes = [1, 8, 8], strides = [1, 1, 1]} : vector<1x8x32xf32> to vector<1x8x8xf32>
    %77 = vector.extract_strided_slice %75 {offsets = [0, 0, 8], sizes = [1, 8, 8], strides = [1, 1, 1]} : vector<1x8x32xf32> to vector<1x8x8xf32>
    %78 = vector.extract_strided_slice %75 {offsets = [0, 0, 16], sizes = [1, 8, 8], strides = [1, 1, 1]} : vector<1x8x32xf32> to vector<1x8x8xf32>
    %79 = vector.extract_strided_slice %75 {offsets = [0, 0, 24], sizes = [1, 8, 8], strides = [1, 1, 1]} : vector<1x8x32xf32> to vector<1x8x8xf32>
    %80 = tpu.concatenate %76, %77, %78, %79 in 0 : vector<1x8x8xf32>, vector<1x8x8xf32>, vector<1x8x8xf32>, vector<1x8x8xf32> -> vector<4x8x8xf32>
    %81 = vector.extract_strided_slice %73 {offsets = [0, 32], sizes = [8, 32], strides = [1, 1]} : vector<8x64xf32> to vector<8x32xf32>
    %82 = vector.shape_cast %81 : vector<8x32xf32> to vector<1x8x32xf32>
    %83 = vector.extract_strided_slice %82 {offsets = [0, 0, 0], sizes = [1, 8, 8], strides = [1, 1, 1]} : vector<1x8x32xf32> to vector<1x8x8xf32>
    %84 = vector.extract_strided_slice %82 {offsets = [0, 0, 8], sizes = [1, 8, 8], strides = [1, 1, 1]} : vector<1x8x32xf32> to vector<1x8x8xf32>
    %85 = vector.extract_strided_slice %82 {offsets = [0, 0, 16], sizes = [1, 8, 8], strides = [1, 1, 1]} : vector<1x8x32xf32> to vector<1x8x8xf32>
    %86 = vector.extract_strided_slice %82 {offsets = [0, 0, 24], sizes = [1, 8, 8], strides = [1, 1, 1]} : vector<1x8x32xf32> to vector<1x8x8xf32>
    %87 = tpu.concatenate %83, %84, %85, %86 in 0 : vector<1x8x8xf32>, vector<1x8x8xf32>, vector<1x8x8xf32>, vector<1x8x8xf32> -> vector<4x8x8xf32>
    %88 = vector.extract_strided_slice %60 {offsets = [0, 0], sizes = [8, 32], strides = [1, 1]} : vector<8x64xf32> to vector<8x32xf32>
    %89 = vector.shape_cast %88 : vector<8x32xf32> to vector<1x8x32xf32>
    %90 = vector.extract_strided_slice %89 {offsets = [0, 0, 0], sizes = [1, 8, 8], strides = [1, 1, 1]} : vector<1x8x32xf32> to vector<1x8x8xf32>
    %91 = vector.extract_strided_slice %89 {offsets = [0, 0, 8], sizes = [1, 8, 8], strides = [1, 1, 1]} : vector<1x8x32xf32> to vector<1x8x8xf32>
    %92 = vector.extract_strided_slice %89 {offsets = [0, 0, 16], sizes = [1, 8, 8], strides = [1, 1, 1]} : vector<1x8x32xf32> to vector<1x8x8xf32>
    %93 = vector.extract_strided_slice %89 {offsets = [0, 0, 24], sizes = [1, 8, 8], strides = [1, 1, 1]} : vector<1x8x32xf32> to vector<1x8x8xf32>
    %94 = tpu.concatenate %90, %91, %92, %93 in 0 : vector<1x8x8xf32>, vector<1x8x8xf32>, vector<1x8x8xf32>, vector<1x8x8xf32> -> vector<4x8x8xf32>
    %cst_42 = arith.constant dense<0.000000e+00> : vector<4x8x8xf32>
    %95 = tpu.matmul %94, %80, %cst_42 {dimension_numbers = #tpu.dot_dimension_numbers<[2], [2], [1], [1], [0, 0, 0, 1, 1, 1], [0], [0]>} : vector<4x8x8xf32>, vector<4x8x8xf32>, vector<4x8x8xf32> -> vector<4x8x8xf32>
    %cst_43 = arith.constant 0.353553385 : f32
    %96 = vector.broadcast %cst_43 : f32 to vector<4x8x8xf32>
    %97 = arith.mulf %95, %96 : vector<4x8x8xf32>
    %98 = vector.shape_cast %66 : vector<8x8xf32> to vector<1x8x8xf32>
    %99 = vector.broadcast %98 : vector<1x8x8xf32> to vector<4x8x8xf32>
    %100 = arith.addf %97, %99 : vector<4x8x8xf32>
    %cst_44 = arith.constant dense<0xFF800000> : vector<4x8xf32>
    %101 = vector.multi_reduction <maximumf>, %100, %cst_44 [2] : vector<4x8x8xf32> to vector<4x8xf32>
    %102 = vector.shape_cast %101 : vector<4x8xf32> to vector<4x8x1xf32>
    %103 = vector.broadcast %102 : vector<4x8x1xf32> to vector<4x8x8xf32>
    %104 = arith.subf %100, %103 : vector<4x8x8xf32>
    %105 = math.exp %104 : vector<4x8x8xf32>
    %cst_45 = arith.constant dense<0.000000e+00> : vector<4x8xf32>
    %106 = vector.multi_reduction <add>, %105, %cst_45 [2] : vector<4x8x8xf32> to vector<4x8xf32>
    %107 = vector.shape_cast %106 : vector<4x8xf32> to vector<4x8x1xf32>
    %108 = tpu.reciprocal %107 {approx = true} : vector<4x8x1xf32> -> vector<4x8x1xf32>
    %109 = vector.broadcast %108 : vector<4x8x1xf32> to vector<4x8x8xf32>
    %110 = arith.mulf %105, %109 : vector<4x8x8xf32>
    %cst_46 = arith.constant dense<0.000000e+00> : vector<4x8x8xf32>
    %111 = tpu.matmul %110, %87, %cst_46 {dimension_numbers = #tpu.dot_dimension_numbers<[2], [1], [1], [2], [0, 0, 0, 1, 1, 2], [0], [0]>} : vector<4x8x8xf32>, vector<4x8x8xf32>, vector<4x8x8xf32> -> vector<4x8x8xf32>
    %112 = vector.extract_strided_slice %111 {offsets = [0, 0, 0], sizes = [1, 8, 8], strides = [1, 1, 1]} : vector<4x8x8xf32> to vector<1x8x8xf32>
    %113 = vector.extract_strided_slice %111 {offsets = [1, 0, 0], sizes = [1, 8, 8], strides = [1, 1, 1]} : vector<4x8x8xf32> to vector<1x8x8xf32>
    %114 = vector.extract_strided_slice %111 {offsets = [2, 0, 0], sizes = [1, 8, 8], strides = [1, 1, 1]} : vector<4x8x8xf32> to vector<1x8x8xf32>
    %115 = vector.extract_strided_slice %111 {offsets = [3, 0, 0], sizes = [1, 8, 8], strides = [1, 1, 1]} : vector<4x8x8xf32> to vector<1x8x8xf32>
    %116 = tpu.concatenate %112, %113, %114, %115 in 2 : vector<1x8x8xf32>, vector<1x8x8xf32>, vector<1x8x8xf32>, vector<1x8x8xf32> -> vector<1x8x32xf32>
    %117 = vector.shape_cast %116 : vector<1x8x32xf32> to vector<8x32xf32>
    %c1_47 = arith.constant 1 : index
    %c0_48 = arith.constant 0 : index
    %c0_49 = arith.constant 0 : index
    %118 = vector.load %arg6[%c1_47, %c0_48, %c0_49] : memref<2x32x64xf32, #tpu.memory_space<vmem>>, vector<1x32x64xf32>
    %119 = vector.shape_cast %118 : vector<1x32x64xf32> to vector<32x64xf32>
    %cst_50 = arith.constant dense<0.000000e+00> : vector<8x64xf32>
    %120 = tpu.matmul %117, %119, %cst_50 {dimension_numbers = #tpu.dot_dimension_numbers<[1], [0], [0], [1], [0, 0, 1, 1], [], []>} : vector<8x32xf32>, vector<32x64xf32>, vector<8x64xf32> -> vector<8x64xf32>
    %c1_51 = arith.constant 1 : index
    %c0_52 = arith.constant 0 : index
    %c0_53 = arith.constant 0 : index
    %121 = vector.load %arg7[%c1_51, %c0_52, %c0_53] : memref<2x1x64xf32, #tpu.memory_space<vmem>>, vector<1x1x64xf32>
    %122 = vector.shape_cast %121 : vector<1x1x64xf32> to vector<1x64xf32>
    %123 = vector.broadcast %122 : vector<1x64xf32> to vector<8x64xf32>
    %124 = arith.addf %120, %123 : vector<8x64xf32>
    %125 = vector.extract_strided_slice %124 {offsets = [0, 0], sizes = [8, 32], strides = [1, 1]} : vector<8x64xf32> to vector<8x32xf32>
    %126 = vector.shape_cast %125 : vector<8x32xf32> to vector<1x8x32xf32>
    %127 = vector.extract_strided_slice %126 {offsets = [0, 0, 0], sizes = [1, 8, 8], strides = [1, 1, 1]} : vector<1x8x32xf32> to vector<1x8x8xf32>
    %128 = vector.extract_strided_slice %126 {offsets = [0, 0, 8], sizes = [1, 8, 8], strides = [1, 1, 1]} : vector<1x8x32xf32> to vector<1x8x8xf32>
    %129 = vector.extract_strided_slice %126 {offsets = [0, 0, 16], sizes = [1, 8, 8], strides = [1, 1, 1]} : vector<1x8x32xf32> to vector<1x8x8xf32>
    %130 = vector.extract_strided_slice %126 {offsets = [0, 0, 24], sizes = [1, 8, 8], strides = [1, 1, 1]} : vector<1x8x32xf32> to vector<1x8x8xf32>
    %131 = tpu.concatenate %127, %128, %129, %130 in 0 : vector<1x8x8xf32>, vector<1x8x8xf32>, vector<1x8x8xf32>, vector<1x8x8xf32> -> vector<4x8x8xf32>
    %132 = vector.extract_strided_slice %124 {offsets = [0, 32], sizes = [8, 32], strides = [1, 1]} : vector<8x64xf32> to vector<8x32xf32>
    %133 = vector.shape_cast %132 : vector<8x32xf32> to vector<1x8x32xf32>
    %134 = vector.extract_strided_slice %133 {offsets = [0, 0, 0], sizes = [1, 8, 8], strides = [1, 1, 1]} : vector<1x8x32xf32> to vector<1x8x8xf32>
    %135 = vector.extract_strided_slice %133 {offsets = [0, 0, 8], sizes = [1, 8, 8], strides = [1, 1, 1]} : vector<1x8x32xf32> to vector<1x8x8xf32>
    %136 = vector.extract_strided_slice %133 {offsets = [0, 0, 16], sizes = [1, 8, 8], strides = [1, 1, 1]} : vector<1x8x32xf32> to vector<1x8x8xf32>
    %137 = vector.extract_strided_slice %133 {offsets = [0, 0, 24], sizes = [1, 8, 8], strides = [1, 1, 1]} : vector<1x8x32xf32> to vector<1x8x8xf32>
    %138 = tpu.concatenate %134, %135, %136, %137 in 0 : vector<1x8x8xf32>, vector<1x8x8xf32>, vector<1x8x8xf32>, vector<1x8x8xf32> -> vector<4x8x8xf32>
    %139 = vector.extract_strided_slice %60 {offsets = [0, 32], sizes = [8, 32], strides = [1, 1]} : vector<8x64xf32> to vector<8x32xf32>
    %140 = vector.shape_cast %139 : vector<8x32xf32> to vector<1x8x32xf32>
    %141 = vector.extract_strided_slice %140 {offsets = [0, 0, 0], sizes = [1, 8, 8], strides = [1, 1, 1]} : vector<1x8x32xf32> to vector<1x8x8xf32>
    %142 = vector.extract_strided_slice %140 {offsets = [0, 0, 8], sizes = [1, 8, 8], strides = [1, 1, 1]} : vector<1x8x32xf32> to vector<1x8x8xf32>
    %143 = vector.extract_strided_slice %140 {offsets = [0, 0, 16], sizes = [1, 8, 8], strides = [1, 1, 1]} : vector<1x8x32xf32> to vector<1x8x8xf32>
    %144 = vector.extract_strided_slice %140 {offsets = [0, 0, 24], sizes = [1, 8, 8], strides = [1, 1, 1]} : vector<1x8x32xf32> to vector<1x8x8xf32>
    %145 = tpu.concatenate %141, %142, %143, %144 in 0 : vector<1x8x8xf32>, vector<1x8x8xf32>, vector<1x8x8xf32>, vector<1x8x8xf32> -> vector<4x8x8xf32>
    %cst_54 = arith.constant dense<0.000000e+00> : vector<4x8x8xf32>
    %146 = tpu.matmul %145, %131, %cst_54 {dimension_numbers = #tpu.dot_dimension_numbers<[2], [2], [1], [1], [0, 0, 0, 1, 1, 1], [0], [0]>} : vector<4x8x8xf32>, vector<4x8x8xf32>, vector<4x8x8xf32> -> vector<4x8x8xf32>
    %cst_55 = arith.constant 0.353553385 : f32
    %147 = vector.broadcast %cst_55 : f32 to vector<4x8x8xf32>
    %148 = arith.mulf %146, %147 : vector<4x8x8xf32>
    %149 = vector.shape_cast %66 : vector<8x8xf32> to vector<1x8x8xf32>
    %150 = vector.broadcast %149 : vector<1x8x8xf32> to vector<4x8x8xf32>
    %151 = arith.addf %148, %150 : vector<4x8x8xf32>
    %cst_56 = arith.constant dense<0xFF800000> : vector<4x8xf32>
    %152 = vector.multi_reduction <maximumf>, %151, %cst_56 [2] : vector<4x8x8xf32> to vector<4x8xf32>
    %153 = vector.shape_cast %152 : vector<4x8xf32> to vector<4x8x1xf32>
    %154 = vector.broadcast %153 : vector<4x8x1xf32> to vector<4x8x8xf32>
    %155 = arith.subf %151, %154 : vector<4x8x8xf32>
    %156 = math.exp %155 : vector<4x8x8xf32>
    %cst_57 = arith.constant dense<0.000000e+00> : vector<4x8xf32>
    %157 = vector.multi_reduction <add>, %156, %cst_57 [2] : vector<4x8x8xf32> to vector<4x8xf32>
    %158 = vector.shape_cast %157 : vector<4x8xf32> to vector<4x8x1xf32>
    %159 = tpu.reciprocal %158 {approx = true} : vector<4x8x1xf32> -> vector<4x8x1xf32>
    %160 = vector.broadcast %159 : vector<4x8x1xf32> to vector<4x8x8xf32>
    %161 = arith.mulf %156, %160 : vector<4x8x8xf32>
    %cst_58 = arith.constant dense<0.000000e+00> : vector<4x8x8xf32>
    %162 = tpu.matmul %161, %138, %cst_58 {dimension_numbers = #tpu.dot_dimension_numbers<[2], [1], [1], [2], [0, 0, 0, 1, 1, 2], [0], [0]>} : vector<4x8x8xf32>, vector<4x8x8xf32>, vector<4x8x8xf32> -> vector<4x8x8xf32>
    %163 = vector.extract_strided_slice %162 {offsets = [0, 0, 0], sizes = [1, 8, 8], strides = [1, 1, 1]} : vector<4x8x8xf32> to vector<1x8x8xf32>
    %164 = vector.extract_strided_slice %162 {offsets = [1, 0, 0], sizes = [1, 8, 8], strides = [1, 1, 1]} : vector<4x8x8xf32> to vector<1x8x8xf32>
    %165 = vector.extract_strided_slice %162 {offsets = [2, 0, 0], sizes = [1, 8, 8], strides = [1, 1, 1]} : vector<4x8x8xf32> to vector<1x8x8xf32>
    %166 = vector.extract_strided_slice %162 {offsets = [3, 0, 0], sizes = [1, 8, 8], strides = [1, 1, 1]} : vector<4x8x8xf32> to vector<1x8x8xf32>
    %167 = tpu.concatenate %163, %164, %165, %166 in 2 : vector<1x8x8xf32>, vector<1x8x8xf32>, vector<1x8x8xf32>, vector<1x8x8xf32> -> vector<1x8x32xf32>
    %168 = vector.shape_cast %167 : vector<1x8x32xf32> to vector<8x32xf32>
    %cst_59 = arith.constant 0.000000e+00 : f32
    %169 = vector.broadcast %cst_59 : f32 to vector<8x32xf32>
    %170 = arith.maximumf %168, %169 : vector<8x32xf32>
    %171 = arith.addf %117, %170 : vector<8x32xf32>
    %c0_60 = arith.constant 0 : index
    %c0_61 = arith.constant 0 : index
    %172 = vector.load %arg8[%c0_60, %c0_61] : memref<1x32xf32, #tpu.memory_space<vmem>>, vector<1x32xf32>
    %cst_62 = arith.constant dense<0.000000e+00> : vector<1x8xf32>
    %173 = tpu.matmul %172, %171, %cst_62 {dimension_numbers = #tpu.dot_dimension_numbers<[1], [1], [0], [0], [0, 0, 1, 0], [], []>} : vector<1x32xf32>, vector<8x32xf32>, vector<1x8xf32> -> vector<1x8xf32>
    %174 = vector.broadcast %2 : vector<1x1xf32> to vector<1x8xf32>
    %175 = arith.addf %173, %174 : vector<1x8xf32>
    %c0_63 = arith.constant 0 : index
    %c0_64 = arith.constant 0 : index
    %c0_65 = arith.constant 0 : index
    %176 = vector.load %arg10[%c0_63, %c0_64, %c0_65] : memref<1x1x8xf32, #tpu.memory_space<vmem>>, vector<1x1x8xf32>
    %177 = vector.shape_cast %176 : vector<1x1x8xf32> to vector<1x8xf32>
    %178 = vector.shape_cast %175 : vector<1x8xf32> to vector<1x1x8xf32>
    tpu.vector_store %arg10[%c0_63, %c0_64, %c0_65], %178 {strides = array<i32>} : memref<1x1x8xf32, #tpu.memory_space<vmem>>, vector<1x1x8xf32>,
    return
  }
  func.func @transform_0(%arg0: i32) -> (i32, i32, i32, i32) {
    %c0_i32 = arith.constant 0 : i32
    %c0_i32_0 = arith.constant 0 : i32
    %c0_i32_1 = arith.constant 0 : i32
    %c0_i32_2 = arith.constant 0 : i32
    return %c0_i32, %arg0, %c0_i32_0, %c0_i32_1 : i32, i32, i32, i32
  }
  func.func @transform_1(%arg0: i32) -> (i32, i32) {
    %c0_i32 = arith.constant 0 : i32
    %c0_i32_0 = arith.constant 0 : i32
    %c0_i32_1 = arith.constant 0 : i32
    return %c0_i32, %c0_i32_0 : i32, i32
  }
  func.func @transform_2(%arg0: i32) -> (i32, i32) {
    %c0_i32 = arith.constant 0 : i32
    %c0_i32_0 = arith.constant 0 : i32
    %c0_i32_1 = arith.constant 0 : i32
    return %c0_i32, %c0_i32_0 : i32, i32
  }
  func.func @transform_3(%arg0: i32) -> (i32, i32) {
    %c0_i32 = arith.constant 0 : i32
    %c0_i32_0 = arith.constant 0 : i32
    %c0_i32_1 = arith.constant 0 : i32
    return %c0_i32, %c0_i32_0 : i32, i32
  }
  func.func @transform_4(%arg0: i32) -> (i32, i32) {
    %c0_i32 = arith.constant 0 : i32
    %c0_i32_0 = arith.constant 0 : i32
    %c0_i32_1 = arith.constant 0 : i32
    return %c0_i32, %c0_i32_0 : i32, i32
  }
  func.func @transform_5(%arg0: i32) -> (i32, i32, i32) {
    %c0_i32 = arith.constant 0 : i32
    %c0_i32_0 = arith.constant 0 : i32
    %c0_i32_1 = arith.constant 0 : i32
    %c0_i32_2 = arith.constant 0 : i32
    return %c0_i32, %c0_i32_0, %c0_i32_1 : i32, i32, i32
  }
  func.func @transform_6(%arg0: i32) -> (i32, i32, i32) {
    %c0_i32 = arith.constant 0 : i32
    %c0_i32_0 = arith.constant 0 : i32
    %c0_i32_1 = arith.constant 0 : i32
    %c0_i32_2 = arith.constant 0 : i32
    return %c0_i32, %c0_i32_0, %c0_i32_1 : i32, i32, i32
  }
  func.func @transform_7(%arg0: i32) -> (i32, i32) {
    %c0_i32 = arith.constant 0 : i32
    %c0_i32_0 = arith.constant 0 : i32
    %c0_i32_1 = arith.constant 0 : i32
    return %c0_i32, %c0_i32_0 : i32, i32
  }
  func.func @transform_8(%arg0: i32) -> (i32, i32) {
    %c0_i32 = arith.constant 0 : i32
    %c0_i32_0 = arith.constant 0 : i32
    %c0_i32_1 = arith.constant 0 : i32
    return %c0_i32, %c0_i32_0 : i32, i32
  }
  func.func @transform_9(%arg0: i32) -> (i32, i32, i32) {
    %c0_i32 = arith.constant 0 : i32
    %c0_i32_0 = arith.constant 0 : i32
    %c0_i32_1 = arith.constant 0 : i32
    return %arg0, %c0_i32, %c0_i32_0 : i32, i32, i32
  }
}

</mosaic_0001>

<bundles_post_ra>
// kernel: sakt_forward_pallas.1
= control target key start
LH: loop header
LB: loop body
LE: loop exit
PB: predicated region body
PF: predicated region fallthrough
CT: control target
= control target key end

     0   :  { %s4200_s0 = inlined_call_operand.hbm [shape: s32[5,2,8,1], index: 0, kind: input, shape index: {}]   ;;  %s4201_s1 = inlined_call_operand.hbm [shape: f32[21,16], index: 1, kind: input, shape index: {}]   ;;  %s4202_s2 = inlined_call_operand.hbm [shape: f32[13,16], index: 2, kind: input, shape index: {}]   ;;  %s4203_s3 = inlined_call_operand.hbm [shape: f32[64,32], index: 3, kind: input, shape index: {}]   ;;  %s4204_s4 = inlined_call_operand.hbm [shape: f32[32,64], index: 4, kind: input, shape index: {}]   ;;  %s4205_s5 = inlined_call_operand.hbm [shape: f32[2,32,64], index: 5, kind: input, shape index: {}]   ;;  %s4206_s6 = inlined_call_operand.hbm [shape: f32[2,1,64], index: 6, kind: input, shape index: {}]   ;;  %s4207_s7 = inlined_call_operand.hbm [shape: f32[1,32], index: 7, kind: input, shape index: {}]   ;;  %s4208_s8 = inlined_call_operand.hbm [shape: f32[1,97], index: 8, kind: input, shape index: {}]   ;;  %s4209_s9 = inlined_call_operand.hbm [shape: f32[2,1,8], index: 9, kind: output, shape index: {}]  }
   0x1   :  { %4216 = sst [smem:[#allocation24_spill]] %s4201_s1 }
   0x2   :  { %4217 = sst [smem:[#allocation25_spill]] %s4202_s2 }
   0x3   :  { %4218 = sst [smem:[#allocation26_spill]] %s4209_s9 }
   0x4   :  { %14 = vsyncpa [#allocation3], 0 }
   0x5   :  { %16 = vsyncpa [#allocation3 + $0x1], 0 }
   0x6   :  { %17 = vsyncpa [#allocation6], 0 }
   0x7   :  { %18 = vsyncpa [#allocation9], 0 }
   0x8   :  { %19 = vsyncpa [#allocation12], 0 }
   0x9   :  { %20 = vsyncpa [#allocation15], 0 }
   0xa   :  { %21 = vsyncpa [#allocation4], 0 }
   0xb   :  { %23 = vsyncpa [#allocation4 + $0x1], 0  ;;  %s3596_s30 = smov 0   ;;  %s3598_s10 = smov 0  }
   0xc   :  { %s3600_s11 = smov 0   ;;  %s3602_s12 = smov 0  }
   0xd LB: > { %s3516_s13 = smov [#allocation5]   ;;  %s3617_s15 = sadd.s32 4294967295, %s3514_s12   ;;  %s3514_s12 = sphi %s3602_s12, %s4247_s12   ;;  %s3510_s11 = sphi %s3600_s11, %s4246_s11   ;;  %s3506_s10 = sphi %s3598_s10, %s4245_s10   ;;  %s3502_s30 = sphi %s3596_s30, %s4244_s30  }
   0xe   : > { %s266_s14 = sshll.u32 %s3516_s13, 4  ;;  %p2665_p0 = scmp.ge.s32.totalorder %s3514_s12, 1  ;;  %s3622_s14 = int_to_ptr.vmem [resolvable:$true] %s266_s14 }
   0xf   : > { %p4211_p1 = scmp.eq.s32.totalorder %s3617_s15, 0  ;;  %p254_p2 = scmp.lt.s32.totalorder %s3514_s12, 3 }
  0x10   : > { %s3517_s17 = smov [#allocation8]   ;;  %s3518_s20 = smov [#allocation11]  }
  0x11   : > { %p3624_p3 = pnand %p2665_p0, %p254_p2  ;;  %s292_s18 = sshll.u32 %s3517_s17, 4  ;;  %s3637_s18 = int_to_ptr.vmem [resolvable:$true] %s292_s18 }
  0x12   : > { %s318_s21 = sshll.u32 %s3518_s20, 4  ;;  %s4221_s1 = sld [smem:[#allocation24_spill]]  ;;  %s3639_s21 = int_to_ptr.vmem [resolvable:$true] %s318_s21 }
  0x13   : > { %s4219_s16 = scalar_select %p3624_p3, 1, 0 }
  0x14   : > { %p3032_p5 = pneg %p3624_p3 }
  0x16   : > { %p3633_p6 = pnand %p3032_p5, %p4211_p1 }
  0x18   : > { %s3178_s24 = scalar_lea.hbm %s4221_s1, 384  ;;  %p3649_p8 = pneg %p3633_p6 }
  0x19   : > { %p3179_p7 = scmp.ne.s32.totalorder %s4221_s1, %s3178_s24  ;;  %p3185_p11 = scmp.lt.u32.totalorder %s3178_s24, %s4221_s1 }
  0x1b   : > { %p3181_p9 = pnand %p3649_p8, %p3179_p7 }
  0x1d   : > { %p3182_p10 = pneg %p3181_p9 }
  0x1f   : > { %p3187_p12 = pnand %p3185_p11, %p3182_p10 }
  0x21   : > { %3190 = shalt.err (!%p3187_p12)
}
  0x22   : > { %s3191_s13 = scalar_lea.vmem %s3622_s14, 384  ;;  %p3199_p5 = scmp.lt.s32.totalorder %s3622_s14, %s3622_s14 }
  0x23   : > { %p3192_p13 = scmp.ne.s32.totalorder %s3622_s14, %s3191_s13  ;;  %p3200_p4 = scmp.lt.s32.totalorder %s3191_s13, %s3191_s13 }
  0x25   : > { %p3194_p0 = pnand %p3192_p13, %p3649_p8  ;;  %p3201_p7 = por %p3200_p4, %p3199_p5 }
  0x27   : > { %p3195_p2 = pneg %p3194_p0 }
  0x29   : > { %p3202_p9 = pnand %p3201_p7, %p3195_p2 }
  0x2b   : > { %3205 = shalt.err (!%p3202_p9)
}
  0x2c   : > { %s4213_s17 = smov 128   ;;  %s4214_s20 = smov 8  }
  0x2d   : > { %3035 = dma.hbm_to_vmem [thread:$0]  (!%p3633_p6), %s4221_s1, 384, %s3622_s14, [#allocation6], %s4213_s17, %s4213_s17, %s4214_s20  }
  0x2e   : > { %s3206_s26 = scalar_lea.hbm %s4203_s3, 1024 }
  0x2f   : > { %p3207_p4 = scmp.ne.s32.totalorder %s4203_s3, %s3206_s26  ;;  %p3213_p12 = scmp.lt.u32.totalorder %s3206_s26, %s4203_s3 }
  0x31   : > { %p3209_p10 = pnand %p3207_p4, %p3649_p8 }
  0x33   : > { %p3210_p11 = pneg %p3209_p10 }
  0x35   : > { %p3215_p13 = pnand %p3213_p12, %p3210_p11 }
  0x37   : > { %3218 = shalt.err (!%p3215_p13)
}
  0x38   : > { %s3219_s14 = scalar_lea.vmem %s3637_s18, 1024  ;;  %p3227_p7 = scmp.lt.s32.totalorder %s3637_s18, %s3637_s18 }
  0x39   : > { %p3220_p0 = scmp.ne.s32.totalorder %s3637_s18, %s3219_s14  ;;  %p3228_p9 = scmp.lt.s32.totalorder %s3219_s14, %s3219_s14 }
  0x3b   : > { %p3222_p2 = pnand %p3220_p0, %p3649_p8  ;;  %p3229_p4 = por %p3228_p9, %p3227_p7 }
  0x3d   : > { %p3223_p5 = pneg %p3222_p2 }
  0x3f   : > { %p3230_p10 = pnand %p3229_p4, %p3223_p5 }
  0x41   : > { %3233 = shalt.err (!%p3230_p10)
}
  0x42   : > { %3041 = dma.hbm_to_vmem [thread:$0]  (!%p3633_p6), %s4203_s3, 1024, %s3637_s18, [#allocation9], %s4213_s17, %s4213_s17, %s4214_s20  }
  0x43   : > { %s3234_s25 = scalar_lea.hbm %s4205_s5, 1024 }
  0x44   : > { %p3235_p11 = scmp.ne.s32.totalorder %s4205_s5, %s3234_s25  ;;  %p3241_p0 = scmp.lt.u32.totalorder %s3234_s25, %s4205_s5 }
  0x46   : > { %p3237_p12 = pnand %p3235_p11, %p3649_p8 }
  0x48   : > { %p3238_p13 = pneg %p3237_p12 }
  0x4a   : > { %p3243_p2 = pnand %p3241_p0, %p3238_p13 }
  0x4c   : > { %3246 = shalt.err (!%p3243_p2)
}
  0x4d   : > { %s3247_s18 = scalar_lea.vmem %s3639_s21, 1024  ;;  %p3255_p4 = scmp.lt.s32.totalorder %s3639_s21, %s3639_s21 }
  0x4e   : > { %p3248_p5 = scmp.ne.s32.totalorder %s3639_s21, %s3247_s18  ;;  %p3256_p10 = scmp.lt.s32.totalorder %s3247_s18, %s3247_s18 }
  0x50   : > { %p3250_p7 = pnand %p3248_p5, %p3649_p8  ;;  %p3257_p11 = por %p3256_p10, %p3255_p4 }
  0x52   : > { %p3251_p9 = pneg %p3250_p7 }
  0x54   : > { %p3258_p12 = pnand %p3257_p11, %p3251_p9 }
  0x56   : > { %3261 = shalt.err (!%p3258_p12)
}
  0x57   : > { %3047 = dma.hbm_to_vmem [thread:$0]  (!%p3633_p6), %s4205_s5, 1024, %s3639_s21, [#allocation12], %s4213_s17, %s4213_s17, %s4214_s20  }
  0x58   : > { %s3521_s22 = smov [#allocation14]   ;;  %s3522_s24 = smov [#allocation7]  }
  0x59   : > { %s345_s23 = sshll.u32 %s3521_s22, 4  ;;  %s279_s25 = sshll.u32 %s3522_s24, 4  ;;  %s346_s23 = int_to_ptr.vmem [resolvable:$true] %s345_s23  ;;  %s280_s25 = int_to_ptr.vmem [resolvable:$true] %s279_s25 }
  0x5a   : > { %s3262_s29 = scalar_lea.hbm %s4207_s7, 16 }
  0x5b   : > { %p3263_p13 = scmp.ne.s32.totalorder %s4207_s7, %s3262_s29  ;;  %p3269_p5 = scmp.lt.u32.totalorder %s3262_s29, %s4207_s7 }
  0x5d   : > { %p3265_p0 = pnand %p3263_p13, %p3649_p8 }
  0x5f   : > { %p3266_p2 = pneg %p3265_p0 }
  0x61   : > { %p3271_p7 = pnand %p3269_p5, %p3266_p2 }
  0x63   : > { %3274 = shalt.err (!%p3271_p7)
}
  0x64   : > { %s3275_s21 = scalar_lea.vmem %s346_s23, 16  ;;  %s3282_s9 = scalar_lea.vmem %s346_s23, 32 }
  0x65   : > { %p3276_p9 = scmp.ne.s32.totalorder %s346_s23, %s3275_s21  ;;  %p3283_p11 = scmp.lt.s32.totalorder %s346_s23, %s346_s23 }
  0x66   : > { %p3284_p12 = scmp.lt.s32.totalorder %s3282_s9, %s3275_s21 }
  0x67   : > { %p3278_p4 = pnand %p3276_p9, %p3649_p8 }
  0x68   : > { %p3285_p1 = por %p3284_p12, %p3283_p11 }
  0x69   : > { %p3279_p10 = pneg %p3278_p4 }
  0x6b   : > { %p3286_p3 = pnand %p3285_p1, %p3279_p10 }
  0x6d   : > { %3289 = shalt.err (!%p3286_p3)
}
  0x6e   : > { %3053 = dma.hbm_to_vmem [thread:$0]  (!%p3633_p6), %s4207_s7, 16, %s346_s23, [#allocation15]  }
  0x6f   : > { %s4223_s2 = sld [smem:[#allocation25_spill]] }
  0x75   : > { %s3290_s28 = scalar_lea.hbm %s4223_s2, 256 }
  0x76   : > { %p3291_p13 = scmp.ne.s32.totalorder %s4223_s2, %s3290_s28  ;;  %p3297_p3 = scmp.lt.u32.totalorder %s3290_s28, %s4223_s2 }
  0x78   : > { %p3293_p0 = pnand %p3291_p13, %p3649_p8 }
  0x7a   : > { %p3294_p1 = pneg %p3293_p0 }
  0x7c   : > { %p3299_p2 = pnand %p3297_p3, %p3294_p1 }
  0x7e   : > { %3302 = shalt.err (!%p3299_p2)
}
  0x7f   : > { %s3303_s21 = scalar_lea.vmem %s280_s25, 256  ;;  %p3311_p4 = scmp.lt.s32.totalorder %s280_s25, %s280_s25 }
  0x80   : > { %p3304_p5 = scmp.ne.s32.totalorder %s280_s25, %s3303_s21  ;;  %p3312_p10 = scmp.lt.s32.totalorder %s3303_s21, %s3303_s21 }
  0x82   : > { %p3306_p7 = pnand %p3304_p5, %p3649_p8  ;;  %p3313_p11 = por %p3312_p10, %p3311_p4 }
  0x84   : > { %p3307_p9 = pneg %p3306_p7 }
  0x86   : > { %p3314_p12 = pnand %p3313_p11, %p3307_p9 }
  0x88   : > { %3317 = shalt.err (!%p3314_p12)
}
  0x89   : > { %3038 = dma.hbm_to_vmem [thread:$0]  (!%p3633_p6), %s4223_s2, 256, %s280_s25, [#allocation6], %s4213_s17, %s4213_s17, %s4214_s20  }
  0x8a   : > { %s3523_s22 = smov [#allocation10]   ;;  %s3524_s1 = smov [#allocation13]  }
  0x8b   : > { %s305_s24 = sshll.u32 %s3523_s22, 4  ;;  %s331_s26 = sshll.u32 %s3524_s1, 4  ;;  %s306_s24 = int_to_ptr.vmem [resolvable:$true] %s305_s24  ;;  %s332_s26 = int_to_ptr.vmem [resolvable:$true] %s331_s26 }
  0x8c   : > { %s3318_s13 = scalar_lea.hbm %s4204_s4, 512 }
  0x8d   : > { %p3319_p13 = scmp.ne.s32.totalorder %s4204_s4, %s3318_s13  ;;  %p3325_p3 = scmp.lt.u32.totalorder %s3318_s13, %s4204_s4 }
  0x8f   : > { %p3321_p0 = pnand %p3319_p13, %p3649_p8 }
  0x91   : > { %p3322_p1 = pneg %p3321_p0 }
  0x93   : > { %p3327_p2 = pnand %p3325_p3, %p3322_p1 }
  0x95   : > { %3330 = shalt.err (!%p3327_p2)
}
  0x96   : > { %s3331_s25 = scalar_lea.vmem %s306_s24, 512  ;;  %p3339_p4 = scmp.lt.s32.totalorder %s306_s24, %s306_s24 }
  0x97   : > { %p3332_p5 = scmp.ne.s32.totalorder %s306_s24, %s3331_s25  ;;  %p3340_p10 = scmp.lt.s32.totalorder %s3331_s25, %s3331_s25 }
  0x99   : > { %p3334_p7 = pnand %p3332_p5, %p3649_p8  ;;  %p3341_p11 = por %p3340_p10, %p3339_p4 }
  0x9b   : > { %p3335_p9 = pneg %p3334_p7 }
  0x9d   : > { %p3342_p12 = pnand %p3341_p11, %p3335_p9 }
  0x9f   : > { %3345 = shalt.err (!%p3342_p12)
}
  0xa0   : > { %3044 = dma.hbm_to_vmem [thread:$0]  (!%p3633_p6), %s4204_s4, 512, %s306_s24, [#allocation9], %s4213_s17, %s4213_s17, %s4214_s20  }
  0xa1   : > { %s3346_s29 = scalar_lea.hbm %s4206_s6, 32 }
  0xa2   : > { %p3347_p13 = scmp.ne.s32.totalorder %s4206_s6, %s3346_s29  ;;  %p3353_p3 = scmp.lt.u32.totalorder %s3346_s29, %s4206_s6 }
  0xa4   : > { %p3349_p0 = pnand %p3347_p13, %p3649_p8 }
  0xa6   : > { %p3350_p1 = pneg %p3349_p0 }
  0xa8   : > { %p3355_p2 = pnand %p3353_p3, %p3350_p1 }
  0xaa   : > { %3358 = shalt.err (!%p3355_p2)
}
  0xab   : > { %s3359_s23 = scalar_lea.vmem %s332_s26, 32  ;;  %p3367_p4 = scmp.lt.s32.totalorder %s332_s26, %s332_s26 }
  0xac   : > { %p3360_p5 = scmp.ne.s32.totalorder %s332_s26, %s3359_s23  ;;  %p3368_p10 = scmp.lt.s32.totalorder %s3359_s23, %s3359_s23 }
  0xae   : > { %p3362_p7 = pnand %p3360_p5, %p3649_p8  ;;  %p3369_p11 = por %p3368_p10, %p3367_p4 }
  0xb0   : > { %p3363_p9 = pneg %p3362_p7 }
  0xb2   : > { %p3370_p12 = pnand %p3369_p11, %p3363_p9 }
  0xb4   : > { %3373 = shalt.err (!%p3370_p12)
}
  0xb5   : > { %s3525_s24 = smov 16   ;;  %s3526_s25 = smov 1  }
  0xb6   : > { %3050 = dma.hbm_to_vmem [thread:$0]  (!%p3633_p6), %s4206_s6, 32, %s332_s26, [#allocation12], %s3525_s24, %s3525_s24, %s3526_s25  }
  0xb7   : > { %s3527_s1 = smov [#allocation16]   ;;  %s3374_s18 = scalar_lea.hbm %s4208_s8, 16 }
  0xb8   : > { %s356_s28 = sshll.u32 %s3527_s1, 4  ;;  %p3375_p13 = scmp.ne.s32.totalorder %s4208_s8, %s3374_s18  ;;  %s357_s28 = int_to_ptr.vmem [resolvable:$true] %s356_s28 }
  0xb9   : > { %p3381_p3 = scmp.lt.u32.totalorder %s3374_s18, %s4208_s8 }
  0xba   : > { %p3377_p0 = pnand %p3375_p13, %p3649_p8 }
  0xbc   : > { %p3378_p1 = pneg %p3377_p0 }
  0xbe   : > { %p3383_p2 = pnand %p3381_p3, %p3378_p1 }
  0xc0   : > { %3386 = shalt.err (!%p3383_p2)
}
  0xc1   : > { %s3387_s26 = scalar_lea.vmem %s357_s28, 16  ;;  %s3394_s24 = scalar_lea.vmem %s357_s28, 32 }
  0xc2   : > { %p3388_p5 = scmp.ne.s32.totalorder %s357_s28, %s3387_s26  ;;  %p3395_p4 = scmp.lt.s32.totalorder %s357_s28, %s357_s28 }
  0xc3   : > { %p3396_p10 = scmp.lt.s32.totalorder %s3394_s24, %s3387_s26 }
  0xc4   : > { %p3390_p7 = pnand %p3388_p5, %p3649_p8 }
  0xc5   : > { %p3397_p11 = por %p3396_p10, %p3395_p4 }
  0xc6   : > { %p3391_p9 = pneg %p3390_p7 }
  0xc8   : > { %p3398_p12 = pnand %p3397_p11, %p3391_p9 }
  0xca   : > { %3401 = shalt.err (!%p3398_p12)
}
  0xcb   : > { %3056 = dma.hbm_to_vmem [thread:$0]  (!%p3633_p6), %s4208_s8, 16, %s357_s28, [#allocation15]  }
  0xcc   : > { %s2664_s27 = sadd.s32 4294967294, %s3514_s12   ;;  %s3823_s19 = sadd.s32 1, %s3514_s12  }
  0xcd   : > { %s33_s17 = ssub.s32 %s3514_s12, %s3823_s19  ;;  %s36_s22 = sadd.s32 1, %s3510_s11 }
  0xce   : > { %p34_p8 = scmp.eq.s32.totalorder %s33_s17, 0  ;;  %p43_p13 = scmp.ne.s32.totalorder %s3510_s11, %s3506_s10 }
  0xcf   : > { %p44_p0 = scmp.eq.s32.totalorder %s3514_s12, 0  ;;  %p49_p1 = scmp.ne.s32.totalorder %s3506_s10, %s3502_s30 }
  0xd0   : > { %s3834_s1 = scalar_select %p34_p8, %s3510_s11, %s36_s22  }
  0xd1   : > { %p45_p3 = por %p44_p0, %p43_p13  ;;  %p4224_p2 = scmp.eq.s32.totalorder %s3617_s15, 0 }
  0xd2   : > { %p241_p6 = scmp.eq.s32.totalorder %s3617_s15, 1  ;;  %p247_p7 = scmp.eq.s32.totalorder %s2664_s27, 1 }
  0xd3   : > { %p3838_p5 = por %p4224_p2, %p49_p1  ;;  %p3073_p9 = scmp.lt.s32.totalorder %s3514_s12, 2 }
  0xd4   : > { %s367_s28 = sand.u32 1, %s3510_s11   ;;  %p3845_p4 = por %p241_p6, %p43_p13 }
  0xd5   : > { %p3849_p10 = por %p247_p7, %p49_p1  ;;  %s2994_s14 = smul.u32 40, %s367_s28 }
  0xd6   : > { %s4226_s13 = scalar_select %p3845_p4, 1, 0 }
  0xd7   : > { %s4227_s18 = scalar_select %p3849_p10, 1, 0 }
  0xd8   : > { %s2675_s21 = sshll.u32 %s3514_s12, 7  ;;  %p3854_p11 = pnand %p3073_p9, %p45_p3 }
  0xd9   : > { %s3861_s25 = scalar_lea.hbm %s4200_s0, %s2675_s21  ;;  %s371_s9 = scalar_lea.vmem [#allocation2], %s2994_s14 }
  0xda   : > { %s377_s27 = sshll.u32 %s371_s9, 4  ;;  %s3865_s17 = scalar_lea.sflag [#allocation3], %s367_s28  ;;  %s3863_s27 = int_to_ptr.vmem [resolvable:$true] %s377_s27 }
  0xdb   : > { %s3402_s22 = scalar_lea.hbm %s3861_s25, 640  ;;  %p3404_p8 = pneg %p3854_p11 }
  0xdc   : > { %p3403_p12 = scmp.ne.s32.totalorder %s3861_s25, %s3402_s22  ;;  %s3407_s24 = scalar_lea.hbm %s4200_s0, 1280 }
  0xdd   : > { %p3408_p1 = scmp.lt.u32.totalorder %s3861_s25, %s4200_s0  ;;  %p3409_p3 = scmp.lt.u32.totalorder %s3407_s24, %s3402_s22 }
  0xde   : > { %p3405_p13 = pnand %p3404_p8, %p3403_p12  ;;  %p3411_p6 = scmp.lt.u32.totalorder %s3402_s22, %s3861_s25 }
  0xdf   : > { %p3410_p2 = por %p3409_p3, %p3408_p1 }
  0xe0   : > { %p3406_p0 = pneg %p3405_p13 }
  0xe1   : > { %p3412_p7 = por %p3411_p6, %p3410_p2 }
  0xe3   : > { %p3413_p9 = pnand %p3412_p7, %p3406_p0 }
  0xe5   : > { %3416 = shalt.err (!%p3413_p9)
}
  0xe6   : > { %s3417_s28 = scalar_lea.vmem %s3863_s27, 640  ;;  %s3528_s14 = smov [#allocation2]  }
  0xe7   : > { %p3418_p12 = scmp.ne.s32.totalorder %s3863_s27, %s3417_s28  ;;  %s3422_s9 = sshll.u32 %s3528_s14, 4  ;;  %s3423_s9 = int_to_ptr.vmem [resolvable:$false] %s3422_s9 }
  0xe8   : > { %s3424_s2 = scalar_lea.vmem %s3423_s9, 1280  ;;  %p3425_p4 = scmp.lt.s32.totalorder %s3863_s27, %s3423_s9 }
  0xe9   : > { %p3420_p13 = pnand %p3418_p12, %p3404_p8  ;;  %p3426_p1 = scmp.lt.s32.totalorder %s3424_s2, %s3417_s28 }
  0xeb   : > { %p3421_p10 = pneg %p3420_p13  ;;  %p3427_p3 = por %p3426_p1, %p3425_p4 }
  0xed   : > { %p3428_p2 = pnand %p3427_p3, %p3421_p10 }
  0xef   : > { %3431 = shalt.err (!%p3428_p2)
}
  0xf0   : > { %s3529_s20 = smov 256   ;;  %s4229_s22 = smov 8  }
  0xf1   : > { %s4230_s21 = smov 128   ;;  %p4231_p8 = scmp.ne.s32.totalorder %s4219_s16, 0 }
  0xf2   : > { %3060 = dma.hbm_to_vmem [thread:$0]  (!%p3854_p11), %s3861_s25, 640, %s3863_s27, %s3865_s17, %s3529_s20, %s4230_s21, %s4229_s22  }
  0xf3   : > { %389 = sbr.rel (%p4231_p8) target bundleno = 3580 (0xdfc), region = 56  ;;  %s3898_s26 = sand.u32 (!%p4231_p8), 1, %s3506_s10  }
  0xf4   : > { %s2995_s24 = smul.u32 (!%p4231_p8), 40, %s3898_s26  ;;  %s392_s28 = scalar_lea.sflag (!%p4231_p8), [#allocation3], %s3898_s26 }
  0xf6   : > { %s395_s14 = scalar_lea.vmem (!%p4231_p8), [#allocation2], %s2995_s24 }
  0xfa   : > { %3477 = dma.done.wait (%p3838_p5), %s392_s28, 640  }
  0xfb   : > { %3479 = vsyncadd (%p3838_p5), %s392_s28, 4294966656  ;;  %p4232_p4 = scmp.eq.s32.totalorder %s3617_s15, 0 }
  0xfd   : > { %3481 = dma.done.wait (%p4232_p4), [#allocation6], 640   ;;  %p4233_p10 = pmov %p4232_p4 }
  0xfe   : > { %p4234_p11 = pmov %p4232_p4 }
  0xff   : > { %3483 = vsyncadd (%p4233_p10), [#allocation6], 4294966656 }
 0x100   : > { %3485 = dma.done.wait (%p4234_p11), [#allocation9], 1536   ;;  %p4235_p0 = pmov %p4232_p4 }
 0x102   : > { %3487 = vsyncadd (%p4235_p0), [#allocation9], 4294965760  ;;  %p4236_p6 = pmov %p4235_p0 }
 0x103   : > { %p4237_p7 = pmov %p4235_p0 }
 0x104   : > { %3489 = dma.done.wait (%p4236_p6), [#allocation12], 1056  }
 0x105   : > { %3491 = vsyncadd (%p4237_p7), [#allocation12], 4294966240  ;;  %p4238_p5 = pmov %p4235_p0 }
 0x106   : > { %p4239_p9 = pmov %p4235_p0 }
 0x107   : > { %3493 = dma.done.wait (%p4238_p5), [#allocation15], 32  }
 0x108   : > { %3495 = vsyncadd (%p4239_p9), [#allocation15], 4294967264  ;;  %v3530_v0 = vmov 0   ;;  %v2692_v1 = vld [vmem:[%s395_s14 + $0x20] sm:$0xff]  ;;  %v2691_v2 = vld [vmem:[%s395_s14 + $0x8] sm:$0xff]  ;;  %vm489_vm0 = vcmask 1044480   ;;  %v465_v15 = vlaneseq }
 0x109   : > { %3144 = vset.pattern.permute.xlu1 %v3530_v0  ;;  %3143 = vset.pattern.permute.xlu0 %v3530_v0  ;;  %v2685_v3 = vld [vmem:[%s395_s14 + $0x18] sm:$0xff]  ;;  %v462_v4 = vld [vmem:[%s395_s14] sm:$0xff]  ;;  %v2698_v5 = vld [vmem:[%s395_s14 + $0x10] sm:$0xff]  ;;  %vm3531_vm1 = vmmov 1   ;;  %vm586_vm3 = vcmask 105472   ;;  %v3532_v19 = vmov 0.0  }
 0x10a   : > { %576 = vperm.xlu1 %3144, %v2692_v1   ;;  %573 = vperm.xlu0 %3143, %v2691_v2   ;;  %v584_v6 = vld [vmem:[#allocation7] sm:$0xff]  ;;  %v673_v7 = vcvt.s32.f32 %v2698_v5  ;;  %v585_v8 = vld [vmem:[#allocation7 + $0x8] sm:$0x1f]  ;;  %v480_v10 = vld [vmem:[#allocation5 + $0x8] sm:$0xff]  ;;  %v3925_v16 = vand.u32 127, %v465_v15  ;;  %vm482_vm6 = vcmask 171008  }
 0x10b   : > { %v479_v9 = vld [vmem:[#allocation5] sm:$0xff]  ;;  %v2958_v11 = vpack.c.bf16 %v585_v8, %v584_v6  ;;  %vm2959_vm2 = vmpackc.low %vm489_vm0, %vm3531_vm1  ;;  %v481_v14 = vld [vmem:[#allocation5 + $0x10] sm:$0x1f]  ;;  %v3533_v29 = vmov 0.0|0.0   ;;  %vm3534_vm9 = vmmov 0   ;;  %v3947_v46 = vshrl.u32 %v465_v15, 7 }
 0x10c   : > { %v2954_v12 = vpack.c.bf16 %v480_v10, %v479_v9  ;;  %v681_v13 = vsub.f32 1.0, %v673_v7  ;;  %v712_v26 = vld [vmem:[#allocation8] sm:$0xff]  ;;  %v713_v27 = vld [vmem:[#allocation8 + $0x8] sm:$0xff]  ;;  %v714_v28 = vld [vmem:[#allocation8 + $0x10] sm:$0xff]  ;;  %s3535_s16 = smov 16   ;;  %s3536_s29 = smov 32  }
 0x10d   : > { %2960 = vmatprep.subr.msk.bf16.mxu1 %vm2959_vm2, %v2958_v11  ;;  %v2965_v30 = vpack.c.bf16 %v713_v27, %v712_v26  ;;  %v715_v31 = vld [vmem:[#allocation8 + $0x18] sm:$0xff]  ;;  %v716_v33 = vld [vmem:[#allocation8 + $0x20] sm:$0xff]  ;;  %v717_v34 = vld [vmem:[#allocation8 + $0x28] sm:$0xff]  ;;  %v723_v51 = vsub.s32 0, %v3947_v46  ;;  %s3537_s23 = smov 48   ;;  %s3538_s25 = smov 96   ;;  %vm883_vm15 = vcmp.gt.s32.totalorder %v3925_v16, %v3947_v46 }
 0x10e   : > { %471 = vperm.xlu1 %3144, %v2685_v3   ;;  %468 = vperm.xlu0 %3143, %v462_v4   ;;  %v2968_v32 = vpack.c.bf16 %v715_v31, %v714_v28  ;;  %v2971_v35 = vpack.c.bf16 %v717_v34, %v716_v33  ;;  %v801_v36 = vld [vmem:[#allocation10] sm:$0xff]  ;;  %v802_v37 = vld [vmem:[#allocation10 + $0x8] sm:$0xff]  ;;  %v718_v39 = vld [vmem:[#allocation8 + $0x30] sm:$0xff]  ;;  %vm701_vm10 = vcmask 130048   ;;  %vm703_vm11 = vcmask 261120   ;;  %s3539_s27 = smov 112  }
 0x10f   : > { %2955 = vmatprep.subr.bf16.mxu0 %v2954_v12  ;;  %2963 = vmatpush3.bf16.msk.msra.mxu1 %vm2959_vm2, %v2958_v11  ;;  %v2977_v38 = vpack.c.bf16 %v802_v37, %v801_v36  ;;  %v719_v40 = vld [vmem:[#allocation8 + $0x38] sm:$0xff]  ;;  %v803_v42 = vld [vmem:[#allocation10 + $0x10] sm:$0xff]  ;;  %v3951_v54 = vld [vmem:[#allocation16] sm:$0x1]  ;;  %vm705_vm12 = vcmask 392192   ;;  %vm726_vm13 = vcmask 523264  }
 0x110   : > { %2957 = vmatpush3.bf16.msra.mxu0 %v2954_v12  ;;  %2964 = vmatprep.subr.bf16.mxu1 %v3533_v29  ;;  %v2974_v41 = vpack.c.bf16 %v719_v40, %v718_v39  ;;  %v804_v43 = vld [vmem:[#allocation10 + $0x18] sm:$0xff]  ;;  %v724_v57 = vrot.slane %v3951_v54, %v723_v51  ;;  %v885_v63 = vld [vmem:[#allocation11] sm:$0xff]  ;;  %v886_v0 = vld [vmem:[#allocation11 + $0x8] sm:$0xff]  ;;  %vm983_vm14 = vcmask 64512   ;;  %s3540_s17 = smov 120   ;;  %s3541_s9 = smov 104  }
 0x111   : > { %2805 = vmatprep.subr.msk.mxu0 %vm489_vm0, %v481_v14  ;;  %v2980_v44 = vpack.c.bf16 %v804_v43, %v803_v42  ;;  %v2983_v3 = vpack.c.bf16 %v886_v0, %v885_v63  ;;  %v887_v6 = vld [vmem:[#allocation11 + $0x10] sm:$0xff]  ;;  %v2701_v15 = vld [vmem:[#allocation13] ss:$0 sm:$0xff]  ;;  %s3542_s2 = smov 8   ;;  %s3543_s20 = smov 24   ;;  %vm2507_vm1 = vcmask 57344  }
 0x112   : > { %684 = vperm.xlu1 %3144, %v681_v13   ;;  %676 = vperm.xlu0 %3143, %v673_v7   ;;  %v888_v7 = vld [vmem:[#allocation11 + $0x18] sm:$0xff]  ;;  %s2731_s22 = sshll.u32 %s3617_s15, 4  ;;  %s460_s21 = scalar_lea.vmem [#allocation17], %s3898_s26 }
 0x113   : > { %v2986_v8 = vpack.c.bf16 %v888_v7, %v887_v6  ;;  %s2522_s24 = sshll.u32 %s460_s21, 4  ;;  %p4241_p13 = scmp.ne.s32.totalorder %s4226_s13, 0  ;;  %s4158_s24 = int_to_ptr.vmem [resolvable:$true] %s2522_s24 }
 0x114   : > { %2806 = vmatpush3.msk.msra.mxu0 %vm489_vm0, %v481_v14  ;;  %vm1650_vm0 = vcmask 195584   ;;  %s3545_s15 = smov [#allocation17]  }
 0x115   : > { %2976 = vmatprep.subr.bf16.mxu0 %v3533_v29 }
 0x189   : > { %v577_v17 = vpop.permute.xlu1 %576  ;;  %v574_v18 = vpop.permute.xlu0 %573 }
 0x18a   : > { %vm579_vm4 = vcmp.eq.s32.totalorder %v577_v17, %v3925_v16  ;;  %vm578_vm5 = vcmp.eq.s32.totalorder %v574_v18, %v3925_v16 }
 0x18b   : > { %v2694_v20 = vsel %vm579_vm4, 1.0, %v3532_v19  ;;  %v2693_v21 = vsel %vm578_vm5, 1.0, %v3532_v19 }
 0x18c   : > { %2814 = vmatprep.mubr.msk.f32.mxu1 %vm586_vm3, %v2693_v21 }
 0x18d   : > { %2815 = vmatmul.mubr.msk.f32.vlgmr.msra.gmra.mrb[0].mxu1 %vm586_vm3, %v2694_v20  ;;  %v472_v22 = vpop.permute.xlu1 %471  ;;  %v469_v23 = vpop.permute.xlu0 %468 }
 0x18e   : > { %vm474_vm7 = vcmp.eq.s32.totalorder %v472_v22, %v3925_v16  ;;  %vm473_vm8 = vcmp.eq.s32.totalorder %v469_v23, %v3925_v16  ;;  %2966 = vmatpush3.bf16.msra.mxu1 %v2965_v30  ;;  %2833 = vmatprep.mubr.msk.f32.mxu1 %vm3534_vm9, %v3532_v19  ;;  %v4021_v30 = vsel %vm883_vm15, -1e+09, %v3532_v19 }
 0x18f   : > { %v2687_v24 = vsel %vm474_vm7, 1.0, %v3532_v19  ;;  %v2686_v25 = vsel %vm473_vm8, 1.0, %v3532_v19  ;;  %2967 = vmatprep.subr.bf16.mxu1 %v3533_v29 }
 0x190   : > { %2807 = vmatprep.mubr.msk.f32.mxu0 %vm482_vm6, %v2686_v25 }
 0x191   : > { %2808 = vmatmul.mubr.msk.f32.vlgmr.msra.gmra.mrb[0].mxu0 %vm482_vm6, %v2687_v24  ;;  %v677_v47 = vpop.permute.xlu0 %676  ;;  %v685_v52 = vpop.permute.xlu1 %684 }
 0x192   : > { %2969 = vmatpush3.bf16.msra.mxu1 %v2968_v32  ;;  %2978 = vmatpush3.bf16.msra.mxu0 %v2977_v38 }
 0x193   : > { %2970 = vmatprep.subr.bf16.mxu1 %v3533_v29  ;;  %2979 = vmatprep.subr.bf16.mxu0 %v3533_v29 }
 0x194   : > { %2844 = vmatprep.mubr.msk.f32.mxu0 %vm3534_vm9, %v3532_v19 }
 0x196   : > { %2972 = vmatpush3.bf16.msra.mxu1 %v2971_v35  ;;  %2981 = vmatpush3.bf16.msra.mxu0 %v2980_v44 }
 0x197   : > { %2973 = vmatprep.subr.bf16.mxu1 %v3533_v29  ;;  %2982 = vmatprep.subr.bf16.mxu0 %v3533_v29 }
 0x19a   : > { %2975 = vmatpush3.bf16.msra.mxu1 %v2974_v41 }
 0x19b   : > { %2858 = vmatprep.subr.mxu1 %v3532_v19 }
 0x260   : > { %v2816_v45 = vpop.f32.mrb[0].mxu1 }
 0x261   : > { %v662_v48 = vpop.f32.mrb[1].mxu1 }
 0x262   : > { %v680_v49 = vmul.f32 %v677_v47, %v662_v48  ;;  %v688_v55 = vmul.f32 %v685_v52, %v662_v48 }
 0x264   : > { %v2809_v50 = vpop.f32.mrb[0].mxu0  ;;  %690 = vrot.lane.b32.xlu0 %v680_v49, %s3535_s16 }
 0x265   : > { %v559_v53 = vpop.f32.mrb[1].mxu0 }
 0x266   : > { %v687_v56 = vmul.f32 %v685_v52, %v559_v53  ;;  %v679_v59 = vmul.f32 %v677_v47, %v559_v53 }
 0x268   : > { %694 = vrot.lane.b32.xlu1 %v687_v56, %s3536_s29  ;;  %698 = vrot.lane.b32.xlu0 %v688_v55, %s3537_s23  ;;  %s2510_s23 = scalar_lea.sflag [#allocation4], %s3898_s26 }
 0x26c   : > { %708 = vrot.lane.b32.xlu1 %v2816_v45, %s3535_s16  ;;  %805 = vrot.lane.b32.xlu0 %v724_v57, %s3538_s25 }
 0x2d6   : > { %v691_v58 = vpop.permute.xlu0 %690 }
 0x2d7   : > { %v702_v60 = vsel %vm701_vm10, %v679_v59, %v691_v58 }
 0x2da   : > { %v695_v61 = vpop.permute.xlu1 %694  ;;  %v699_v62 = vpop.permute.xlu0 %698 }
 0x2db   : > { %v704_v1 = vsel %vm703_vm11, %v702_v60, %v695_v61 }
 0x2dc   : > { %v706_v2 = vsel %vm705_vm12, %v704_v1, %v699_v62 }
 0x2dd   : > { %2834 = vmatmul.mubr.msk.f32.vlgmr.msra.gmra.mrb[2].mxu1 %vm726_vm13, %v706_v2 }
 0x2de   : > { %v709_v4 = vpop.permute.xlu1 %708  ;;  %2860 = vmatprep.mubr.msk.f32.mxu1 %vm3534_vm9, %v3532_v19  ;;  %v806_v21 = vpop.permute.xlu0 %805 }
 0x2df   : > { %v711_v5 = vsel %vm701_vm10, %v2809_v50, %v709_v4 }
 0x2e0   : > { %2845 = vmatmul.mubr.msk.f32.vlgmr.msra.gmra.mrb[2].mxu0 %vm703_vm11, %v711_v5 }
 0x2e1   : > { %2984 = vmatpush3.bf16.msra.mxu0 %v2983_v3  ;;  %2855 = vmatprep.mubr.msk.f32.mxu0 %vm3534_vm9, %v3532_v19 }
 0x2e2   : > { %2985 = vmatprep.subr.bf16.mxu0 %v3533_v29 }
 0x2e5   : > { %2987 = vmatpush3.bf16.msra.mxu0 %v2986_v8 }
 0x2e6   : > { %2863 = vmatprep.subr.mxu0 %v3532_v19 }
 0x3b0   : > { %v796_v9 = vpop.f32.mrb[2].mxu1 }
 0x3b1   : > { %v797_v10 = vadd.f32 %v796_v9, %v724_v57  ;;  %v2835_v11 = vpop.f32.mrb[3].mxu1 }
 0x3b3   : > { %v800_v12 = vmax.f32 %v797_v10, 0.0  ;;  %v877_v13 = vpop.f32.mrb[2].mxu0 }
 0x3b4   : > { %v2846_v14 = vpop.f32.mrb[3].mxu0  ;;  %v3974_v22 = vadd.f32 %v877_v13, %v806_v21 }
 0x3b5   : > { %2856 = vmatmul.mubr.msk.f32.vlgmr.msra.gmra.mrb[4].mxu0 %vm703_vm11, %v800_v12 }
 0x3b6   : > { %2865 = vmatprep.mubr.msk.f32.mxu0 %vm3534_vm9, %v3532_v19 }
 0x488   : > { %v965_v17 = vpop.f32.mrb[4].mxu0 }
 0x489   : > { %v966_v18 = vadd.f32 %v2701_v15, %v965_v17  ;;  %v2857_v20 = vpop.f32.mrb[5].mxu0 }
 0x48b   : > { %972 = vrot.lane.b32.xlu0 %v966_v18, %s3539_s27  ;;  %970 = vrot.lane.b32.xlu1 %v966_v18, %s3540_s17 }
 0x48c   : > { %2859 = vmatpush3.xpose.msk.msra.mxu1 %vm983_vm14, %v966_v18 }
 0x48d   : > { %2868 = vmatprep.subr.mxu1 %v3532_v19 }
 0x48f   : > { %2861 = vmatmul.mubr.msk.f32.vlgmr.msra.gmra.mrb[4].mxu1 %vm983_vm14, %v3974_v22  ;;  %974 = vrot.lane.b32.xlu0 %v966_v18, %s3541_s9 }
 0x490   : > { %977 = vrot.lane.b32.xlu1 %v3974_v22, %s3540_s17  ;;  %2870 = vmatprep.mubr.msk.f32.mxu1 %vm3534_vm9, %v3532_v19 }
 0x493   : > { %981 = vrot.lane.b32.xlu0 %v3974_v22, %s3541_s9 }
 0x494   : > { %979 = vrot.lane.b32.xlu1 %v3974_v22, %s3539_s27 }
 0x4fd   : > { %v3988_v23 = vpop.permute.xlu0 %972  ;;  %v971_v24 = vpop.permute.xlu1 %970 }
 0x4fe   : > { %2864 = vmatpush3.xpose.msk.msra.mxu0 %vm983_vm14, %v971_v24  ;;  %2869 = vmatpush3.xpose.msk.msra.mxu1 %vm983_vm14, %v3988_v23 }
 0x4ff   : > { %2873 = vmatprep.subr.mxu0 %v3532_v19  ;;  %2878 = vmatprep.subr.mxu1 %v3532_v19 }
 0x501   : > { %v3995_v25 = vpop.permute.xlu0 %974 }
 0x502   : > { %v3997_v26 = vpop.permute.xlu1 %977 }
 0x503   : > { %2866 = vmatmul.mubr.msk.f32.vlgmr.msra.gmra.mrb[6].mxu0 %vm983_vm14, %v3997_v26 }
 0x504   : > { %2874 = vmatpush3.xpose.msk.msra.mxu0 %vm983_vm14, %v3995_v25  ;;  %2875 = vmatprep.mubr.msk.f32.mxu0 %vm3534_vm9, %v3532_v19 }
 0x505   : > { %v4005_v27 = vpop.permute.xlu0 %981  ;;  %2883 = vmatprep.subr.mxu0 %v3532_v19 }
 0x506   : > { %v4008_v28 = vpop.permute.xlu1 %979 }
 0x507   : > { %2871 = vmatmul.mubr.msk.f32.vlgmr.msra.gmra.mrb[6].mxu1 %vm983_vm14, %v4008_v28  ;;  %2876 = vmatmul.mubr.msk.f32.vlgmr.msra.gmra.mrb[8].mxu0 %vm983_vm14, %v4005_v27 }
 0x508   : > { %2880 = vmatprep.mubr.msk.f32.mxu1 %vm3534_vm9, %v3532_v19  ;;  %2885 = vmatprep.mubr.msk.f32.mxu0 %vm3534_vm9, %v3532_v19 }
 0x562   : > { %v1054_v31 = vpop.f32.mrb[4].mxu1 }
 0x563   : > { %v1280_v32 = vmul.f32 0.35355338, %v1054_v31  ;;  %v2862_v33 = vpop.f32.mrb[5].mxu1 }
 0x564   : > { %v1653_v33 = vld [vmem:[#allocation11 + $0x20] sm:$0xff] }
 0x565   : > { %v1284_v34 = vadd.f32 %v1280_v32, %v4021_v30 }
 0x567   : > { %v1288_v35 = vsel %vm983_vm14, %v1284_v34, -inf }
 0x568   : > { %1289 = vmax.xlane.f32.xlu1 %v1288_v35 }
 0x5d6   : > { %v1128_v36 = vpop.f32.mrb[6].mxu0 }
 0x5d7   : > { %v1281_v37 = vmul.f32 0.35355338, %v1128_v36  ;;  %v2867_v38 = vpop.f32.mrb[7].mxu0 }
 0x5d8   : > { %v1655_v38 = vld [vmem:[#allocation11 + $0x30] sm:$0xff] }
 0x5d9   : > { %v1285_v39 = vadd.f32 %v1281_v37, %v4021_v30 }
 0x5da   : > { %v1202_v40 = vpop.f32.mrb[6].mxu1  ;;  %v1276_v41 = vpop.f32.mrb[8].mxu0 }
 0x5db   : > { %v1282_v42 = vmul.f32 0.35355338, %v1202_v40  ;;  %v1283_v16 = vmul.f32 0.35355338, %v1276_v41  ;;  %v2872_v43 = vpop.f32.mrb[7].mxu1  ;;  %v2877_v44 = vpop.f32.mrb[9].mxu0 }
 0x5dc   : > { %v1291_v45 = vsel %vm983_vm14, %v1285_v39, -inf }
 0x5dd   : > { %1292 = vmax.xlane.f32.xlu0 %v1291_v45  ;;  %v1286_v47 = vadd.f32 %v1282_v42, %v4021_v30  ;;  %v1287_v48 = vadd.f32 %v1283_v16, %v4021_v30 }
 0x5df   : > { %v1294_v49 = vsel %vm983_vm14, %v1286_v47, -inf  ;;  %v1297_v50 = vsel %vm983_vm14, %v1287_v48, -inf }
 0x5e0   : > { %1298 = vmax.xlane.f32.xlu1 %v1297_v50 }
 0x5e1   : > { %1295 = vmax.xlane.f32.xlu0 %v1294_v49 }
 0x5f1   : > { %1408 = vrot.lane.b32.xlu1 %v971_v24, %s3538_s25 }
 0x5f5   : > { %v1290_v52 = vpop.xlane.xlu1 %1289 }
 0x5f6   : > { %v1300_v53 = vsub.f32 %v1284_v34, %v1290_v52  ;;  %v1654_v34 = vld [vmem:[#allocation11 + $0x28] sm:$0xff] }
 0x5f7   : > { %1332 = vrot.lane.b32.xlu0 %v966_v18, %s3538_s25  ;;  %v2989_v35 = vpack.c.bf16 %v1654_v34, %v1653_v33 }
 0x5f8   : > { %v1304_v55 = vmul.f32 1.442695, %v1300_v53  ;;  %v2715_v53 = vld [vmem:[#allocation13 + $0x1] ss:$0 sm:$0xff] }
 0x5fa   : > { %3146 = vpow2.f32 %v1304_v55 }
 0x604   : > { %v3147_v56 = vpop.eup %3146 }
 0x605   : > { %v1312_v57 = vsel %vm983_vm14, %v3147_v56, 0.0 }
 0x616   : > { %1313 = vadd.xlane.f32.xlu0 %v1312_v57 }
 0x66a   : > { %v1293_v58 = vpop.xlane.xlu0 %1292 }
 0x66b   : > { %v1301_v59 = vsub.f32 %v1285_v39, %v1293_v58  ;;  %v1656_v39 = vld [vmem:[#allocation11 + $0x38] sm:$0xff] }
 0x66c   : > { %v2992_v40 = vpack.c.bf16 %v1656_v39, %v1655_v38 }
 0x66d   : > { %v1306_v60 = vmul.f32 1.442695, %v1301_v59  ;;  %v1299_v61 = vpop.xlane.xlu1 %1298 }
 0x66e   : > { %v1296_v62 = vpop.xlane.xlu0 %1295  ;;  %v1303_v63 = vsub.f32 %v1287_v48, %v1299_v61 }
 0x66f   : > { %3148 = vpow2.f32 %v1306_v60  ;;  %v1302_v0 = vsub.f32 %v1286_v47, %v1296_v62 }
 0x670   : > { %v1310_v1 = vmul.f32 1.442695, %v1303_v63 }
 0x671   : > { %v1308_v2 = vmul.f32 1.442695, %v1302_v0  ;;  %v1409_v3 = vpop.permute.xlu1 %1408 }
 0x672   : > { %3150 = vpow2.f32 %v1310_v1  ;;  %v1333_v4 = vpop.permute.xlu0 %1332  ;;  %2884 = vmatpush3.msra.mxu0 %v1409_v3 }
 0x673   : > { %3152 = vpow2.f32 %v1308_v2  ;;  %2879 = vmatpush3.msra.mxu1 %v1333_v4  ;;  %2893 = vmatprep.subr.mxu0 %v3532_v19 }
 0x674   : > { %2888 = vmatprep.subr.mxu1 %v3532_v19 }
 0x679   : > { %v3149_v5 = vpop.eup %3148 }
 0x67a   : > { %v1315_v6 = vsel %vm983_vm14, %v3149_v5, 0.0 }
 0x67b   : > { %1316 = vadd.xlane.f32.xlu1 %v1315_v6 }
 0x67c   : > { %v3151_v7 = vpop.eup %3150 }
 0x67d   : > { %v3153_v8 = vpop.eup %3152  ;;  %v1321_v9 = vsel %vm983_vm14, %v3151_v7, 0.0 }
 0x67e   : > { %v1318_v10 = vsel %vm983_vm14, %v3153_v8, 0.0 }
 0x67f   : > { %1319 = vadd.xlane.f32.xlu0 %v1318_v10  ;;  %1322 = vadd.xlane.f32.xlu1 %v1321_v9 }
 0x690   : > { %1484 = vrot.lane.b32.xlu1 %v3988_v23, %s3538_s25 }
 0x695   : > { %1560 = vrot.lane.b32.xlu0 %v3995_v25, %s3538_s25 }
 0x6a3   : > { %v1314_v11 = vpop.xlane.xlu0 %1313 }
 0x6a4   : > { %3154 = vrcp.f32 %v1314_v11 }
 0x6ae   : > { %v3155_v12 = vpop.eup %3154 }
 0x6af   : > { %v1328_v13 = vmul.f32 %v3155_v12, %v3147_v56 }
 0x6b1   : > { %2881 = vmatmul.mubr.msk.f32.vlgmr.msra.gmra.mrb[8].mxu1 %vm983_vm14, %v1328_v13 }
 0x6b2   : > { %2890 = vmatprep.mubr.msk.f32.mxu1 %vm3534_vm9, %v3532_v19 }
 0x708   : > { %v1317_v14 = vpop.xlane.xlu1 %1316 }
 0x709   : > { %3156 = vrcp.f32 %v1317_v14 }
 0x70c   : > { %v1320_v15 = vpop.xlane.xlu0 %1319  ;;  %v1323_v17 = vpop.xlane.xlu1 %1322 }
 0x70d   : > { %3158 = vrcp.f32 %v1320_v15 }
 0x70e   : > { %3160 = vrcp.f32 %v1323_v17 }
 0x710   : > { %v1485_v18 = vpop.permute.xlu1 %1484  ;;  %v1561_v23 = vpop.permute.xlu0 %1560 }
 0x711   : > { %2889 = vmatpush3.msra.mxu1 %v1485_v18 }
 0x712   : > { %2988 = vmatprep.subr.bf16.mxu1 %v3533_v29 }
 0x713   : > { %v3157_v20 = vpop.eup %3156 }
 0x714   : > { %v1329_v21 = vmul.f32 %v3157_v20, %v3149_v5 }
 0x716   : > { %2886 = vmatmul.mubr.msk.f32.vlgmr.msra.gmra.mrb[10].mxu0 %vm983_vm14, %v1329_v21 }
 0x717   : > { %v3159_v24 = vpop.eup %3158  ;;  %2894 = vmatpush3.msra.mxu0 %v1561_v23  ;;  %2895 = vmatprep.mubr.msk.f32.mxu0 %vm3534_vm9, %v3532_v19 }
 0x718   : > { %v3161_v25 = vpop.eup %3160  ;;  %v1330_v31 = vmul.f32 %v3159_v24, %v3153_v8  ;;  %2909 = vmatprep.subr.mxu0 %v3532_v19 }
 0x719   : > { %v1331_v32 = vmul.f32 %v3161_v25, %v3151_v7 }
 0x71a   : > { %2891 = vmatmul.mubr.msk.f32.vlgmr.msra.gmra.mrb[10].mxu1 %vm983_vm14, %v1330_v31 }
 0x71b   : > { %2896 = vmatmul.mubr.msk.f32.vlgmr.msra.gmra.mrb[12].mxu0 %vm983_vm14, %v1331_v32  ;;  %2906 = vmatprep.mubr.msk.f32.mxu1 %vm3534_vm9, %v3532_v19 }
 0x71c   : > { %2911 = vmatprep.mubr.msk.f32.mxu0 %vm3534_vm9, %v3532_v19  ;;  %2990 = vmatpush3.bf16.msra.mxu1 %v2989_v35 }
 0x71d   : > { %2991 = vmatprep.subr.bf16.mxu1 %v3533_v29 }
 0x720   : > { %2993 = vmatpush3.bf16.msra.mxu1 %v2992_v40 }
 0x721   : > { %2919 = vmatprep.subr.mxu1 %v3532_v19 }
 0x784   : > { %v1404_v36 = vpop.f32.mrb[8].mxu1 }
 0x785   : > { %v2882_v37 = vpop.f32.mrb[9].mxu1 }
 0x7e9   : > { %v1480_v41 = vpop.f32.mrb[10].mxu0 }
 0x7ea   : > { %1637 = vrot.lane.b32.xlu1 %v1480_v41, %s3542_s2  ;;  %v2887_v42 = vpop.f32.mrb[11].mxu0 }
 0x7ed   : > { %v1556_v16 = vpop.f32.mrb[10].mxu1 }
 0x7ee   : > { %v1632_v43 = vpop.f32.mrb[12].mxu0  ;;  %1641 = vrot.lane.b32.xlu0 %v1556_v16, %s3535_s16  ;;  %v2892_v44 = vpop.f32.mrb[11].mxu1 }
 0x7ef   : > { %1645 = vrot.lane.b32.xlu1 %v1632_v43, %s3543_s20  ;;  %v2897_v29 = vpop.f32.mrb[13].mxu0 }
 0x7f2   : > { %1745 = vrot.lane.b32.xlu0 %v3974_v22, %s3538_s25 }
 0x85c   : > { %v1638_v45 = vpop.permute.xlu1 %1637 }
 0x85d   : > { %v1648_v47 = vsel %vm983_vm14, %v1404_v36, %v1638_v45 }
 0x860   : > { %v1642_v48 = vpop.permute.xlu0 %1641 }
 0x861   : > { %v1649_v49 = vsel %vm701_vm10, %v1648_v47, %v1642_v48  ;;  %v1646_v50 = vpop.permute.xlu1 %1645 }
 0x862   : > { %v4067_v52 = vsel %vm1650_vm0, %v1649_v49, %v1646_v50 }
 0x863   : > { %2907 = vmatmul.mubr.msk.f32.vlgmr.msra.gmra.mrb[12].mxu1 %vm703_vm11, %v4067_v52 }
 0x864   : > { %2921 = vmatprep.mubr.msk.f32.mxu1 %vm3534_vm9, %v3532_v19  ;;  %v1746_v57 = vpop.permute.xlu0 %1745 }
 0x936   : > { %v1734_v55 = vpop.f32.mrb[12].mxu1 }
 0x937   : > { %v1735_v22 = vadd.f32 %v2715_v53, %v1734_v55  ;;  %v2908_v56 = vpop.f32.mrb[13].mxu1 }
 0x939   : > { %1741 = vrot.lane.b32.xlu0 %v1735_v22, %s3539_s27  ;;  %1739 = vrot.lane.b32.xlu1 %v1735_v22, %s3540_s17  ;;  %s3436_s27 = sshll.u32 %s3545_s15, 4  ;;  %s3437_s27 = int_to_ptr.vmem [resolvable:$false] %s3436_s27 }
 0x93a   : > { %2910 = vmatpush3.xpose.msk.msra.mxu0 %vm983_vm14, %v1735_v22  ;;  %s3438_s17 = scalar_lea.vmem %s3437_s27, 32  ;;  %p3439_p2 = scmp.lt.s32.totalorder %s4158_s24, %s3437_s27 }
 0x93b   : > { %2914 = vmatprep.subr.mxu0 %v3532_v19 }
 0x93d   : > { %2912 = vmatmul.mubr.msk.f32.vlgmr.msra.gmra.mrb[14].mxu0 %vm983_vm14, %v1746_v57  ;;  %1743 = vrot.lane.b32.xlu0 %v1735_v22, %s3541_s9 }
 0x93e   : > { %1821 = vrot.lane.b32.xlu1 %v3997_v26, %s3538_s25  ;;  %2916 = vmatprep.mubr.msk.f32.mxu0 %vm3534_vm9, %v3532_v19 }
 0x941   : > { %1973 = vrot.lane.b32.xlu0 %v4005_v27, %s3538_s25 }
 0x942   : > { %1897 = vrot.lane.b32.xlu1 %v4008_v28, %s3538_s25 }
 0x9ab   : > { %v4087_v58 = vpop.permute.xlu0 %1741  ;;  %v1740_v59 = vpop.permute.xlu1 %1739 }
 0x9ac   : > { %2915 = vmatpush3.xpose.msk.msra.mxu0 %vm983_vm14, %v1740_v59  ;;  %2920 = vmatpush3.xpose.msk.msra.mxu1 %vm983_vm14, %v4087_v58 }
 0x9ad   : > { %2924 = vmatprep.subr.mxu0 %v3532_v19  ;;  %2929 = vmatprep.subr.mxu1 %v3532_v19 }
 0x9af   : > { %v4094_v26 = vpop.permute.xlu0 %1743 }
 0x9b0   : > { %v1822_v60 = vpop.permute.xlu1 %1821 }
 0x9b1   : > { %2917 = vmatmul.mubr.msk.f32.vlgmr.msra.gmra.mrb[16].mxu0 %vm983_vm14, %v1822_v60 }
 0x9b2   : > { %2925 = vmatpush3.xpose.msk.msra.mxu0 %vm983_vm14, %v4094_v26  ;;  %2926 = vmatprep.mubr.msk.f32.mxu0 %vm3534_vm9, %v3532_v19 }
 0x9b3   : > { %v1974_v27 = vpop.permute.xlu0 %1973  ;;  %2934 = vmatprep.subr.mxu0 %v3532_v19 }
 0x9b4   : > { %v1898_v28 = vpop.permute.xlu1 %1897 }
 0x9b5   : > { %2922 = vmatmul.mubr.msk.f32.vlgmr.msra.gmra.mrb[14].mxu1 %vm983_vm14, %v1898_v28  ;;  %2927 = vmatmul.mubr.msk.f32.vlgmr.msra.gmra.mrb[18].mxu0 %vm983_vm14, %v1974_v27 }
 0x9b6   : > { %2931 = vmatprep.mubr.msk.f32.mxu1 %vm3534_vm9, %v3532_v19  ;;  %2936 = vmatprep.mubr.msk.f32.mxu0 %vm3534_vm9, %v3532_v19 }
 0xa10   : > { %v1817_v61 = vpop.f32.mrb[14].mxu0 }
 0xa11   : > { %v2049_v62 = vmul.f32 0.35355338, %v1817_v61  ;;  %v2913_v63 = vpop.f32.mrb[15].mxu0 }
 0xa13   : > { %v2053_v0 = vadd.f32 %v2049_v62, %v4021_v30  ;;  %v3544_v62 = vmov 96  }
 0xa14   : > { %3145 = vset.pattern.permute.xlu0 %v3544_v62 }
 0xa15   : > { %v2057_v1 = vsel %vm983_vm14, %v2053_v0, -inf }
 0xa16   : > { %2058 = vmax.xlane.f32.xlu1 %v2057_v1 }
 0xa84   : > { %v1893_v2 = vpop.f32.mrb[16].mxu0 }
 0xa85   : > { %v2050_v3 = vmul.f32 0.35355338, %v1893_v2  ;;  %v2918_v4 = vpop.f32.mrb[17].mxu0 }
 0xa87   : > { %v2054_v5 = vadd.f32 %v2050_v3, %v4021_v30 }
 0xa88   : > { %v1969_v6 = vpop.f32.mrb[14].mxu1  ;;  %v2045_v7 = vpop.f32.mrb[18].mxu0 }
 0xa89   : > { %v2051_v8 = vmul.f32 0.35355338, %v1969_v6  ;;  %v2052_v9 = vmul.f32 0.35355338, %v2045_v7  ;;  %v2923_v10 = vpop.f32.mrb[15].mxu1  ;;  %v2928_v11 = vpop.f32.mrb[19].mxu0 }
 0xa8a   : > { %v2060_v12 = vsel %vm983_vm14, %v2054_v5, -inf  ;;  %v2422_v10 = vld [vmem:[#allocation14] sm:$0x1] }
 0xa8b   : > { %2061 = vmax.xlane.f32.xlu0 %v2060_v12  ;;  %v2055_v13 = vadd.f32 %v2051_v8, %v4021_v30  ;;  %v2056_v14 = vadd.f32 %v2052_v9, %v4021_v30 }
 0xa8d   : > { %v2063_v15 = vsel %vm983_vm14, %v2055_v13, -inf  ;;  %v2066_v17 = vsel %vm983_vm14, %v2056_v14, -inf }
 0xa8e   : > { %2067 = vmax.xlane.f32.xlu1 %v2066_v17 }
 0xa8f   : > { %2064 = vmax.xlane.f32.xlu0 %v2063_v15 }
 0xa9f   : > { %2177 = vrot.lane.b32.xlu1 %v1740_v59, %s3538_s25 }
 0xaa3   : > { %v2059_v18 = vpop.xlane.xlu1 %2058 }
 0xaa4   : > { %v2069_v20 = vsub.f32 %v2053_v0, %v2059_v18 }
 0xaa5   : > { %2101 = vrot.lane.b32.xlu0 %v1735_v22, %s3538_s25 }
 0xaa6   : > { %v2073_v21 = vmul.f32 1.442695, %v2069_v20 }
 0xaa8   : > { %3162 = vpow2.f32 %v2073_v21 }
 0xab2   : > { %v3163_v23 = vpop.eup %3162 }
 0xab3   : > { %v2081_v24 = vsel %vm983_vm14, %v3163_v23, 0.0 }
 0xac4   : > { %2082 = vadd.xlane.f32.xlu0 %v2081_v24 }
 0xb18   : > { %v2062_v25 = vpop.xlane.xlu0 %2061 }
 0xb19   : > { %v2070_v30 = vsub.f32 %v2054_v5, %v2062_v25 }
 0xb1b   : > { %v2075_v31 = vmul.f32 1.442695, %v2070_v30  ;;  %v2068_v32 = vpop.xlane.xlu1 %2067 }
 0xb1c   : > { %v2065_v33 = vpop.xlane.xlu0 %2064  ;;  %v2072_v34 = vsub.f32 %v2056_v14, %v2068_v32 }
 0xb1d   : > { %3164 = vpow2.f32 %v2075_v31  ;;  %v2071_v35 = vsub.f32 %v2055_v13, %v2065_v33 }
 0xb1e   : > { %v2079_v36 = vmul.f32 1.442695, %v2072_v34 }
 0xb1f   : > { %v2077_v37 = vmul.f32 1.442695, %v2071_v35  ;;  %v2178_v38 = vpop.permute.xlu1 %2177 }
 0xb20   : > { %3166 = vpow2.f32 %v2079_v36  ;;  %v2102_v39 = vpop.permute.xlu0 %2101  ;;  %2935 = vmatpush3.msra.mxu0 %v2178_v38 }
 0xb21   : > { %3168 = vpow2.f32 %v2077_v37  ;;  %2930 = vmatpush3.msra.mxu1 %v2102_v39  ;;  %2944 = vmatprep.subr.mxu0 %v3532_v19 }
 0xb22   : > { %2939 = vmatprep.subr.mxu1 %v3532_v19 }
 0xb27   : > { %v3165_v40 = vpop.eup %3164 }
 0xb28   : > { %v2084_v41 = vsel %vm983_vm14, %v3165_v40, 0.0 }
 0xb29   : > { %2085 = vadd.xlane.f32.xlu1 %v2084_v41 }
 0xb2a   : > { %v3167_v42 = vpop.eup %3166 }
 0xb2b   : > { %v3169_v16 = vpop.eup %3168  ;;  %v2090_v43 = vsel %vm983_vm14, %v3167_v42, 0.0 }
 0xb2c   : > { %v2087_v44 = vsel %vm983_vm14, %v3169_v16, 0.0 }
 0xb2d   : > { %2088 = vadd.xlane.f32.xlu0 %v2087_v44  ;;  %2091 = vadd.xlane.f32.xlu1 %v2090_v43 }
 0xb3e   : > { %2253 = vrot.lane.b32.xlu1 %v4087_v58, %s3538_s25 }
 0xb43   : > { %2329 = vrot.lane.b32.xlu0 %v4094_v26, %s3538_s25  ;;  %s3432_s25 = scalar_lea.vmem %s4158_s24, 16 }
 0xb44   : > { %p3433_p12 = scmp.ne.s32.totalorder %s4158_s24, %s3432_s25  ;;  %p3440_p8 = scmp.lt.s32.totalorder %s3438_s17, %s3432_s25 }
 0xb46   : > { %p3434_p1 = pnand %p3433_p12, %p4241_p13  ;;  %p3441_p4 = por %p3440_p8, %p3439_p2 }
 0xb48   : > { %p3435_p3 = pneg %p3434_p1 }
 0xb4a   : > { %p3442_p10 = pnand %p3441_p4, %p3435_p3 }
 0xb51   : > { %v2083_v29 = vpop.xlane.xlu0 %2082 }
 0xb52   : > { %3170 = vrcp.f32 %v2083_v29 }
 0xb5c   : > { %v3171_v45 = vpop.eup %3170 }
 0xb5d   : > { %v2097_v47 = vmul.f32 %v3171_v45, %v3163_v23 }
 0xb5f   : > { %2932 = vmatmul.mubr.msk.f32.vlgmr.msra.gmra.mrb[16].mxu1 %vm983_vm14, %v2097_v47 }
 0xb60   : > { %2941 = vmatprep.mubr.msk.f32.mxu1 %vm3534_vm9, %v3532_v19 }
 0xbb6   : > { %v2086_v48 = vpop.xlane.xlu1 %2085 }
 0xbb7   : > { %3172 = vrcp.f32 %v2086_v48 }
 0xbba   : > { %v2089_v49 = vpop.xlane.xlu0 %2088  ;;  %v2092_v50 = vpop.xlane.xlu1 %2091 }
 0xbbb   : > { %3174 = vrcp.f32 %v2089_v49 }
 0xbbc   : > { %3176 = vrcp.f32 %v2092_v50 }
 0xbbe   : > { %v2254_v53 = vpop.permute.xlu1 %2253  ;;  %v2330_v56 = vpop.permute.xlu0 %2329 }
 0xbbf   : > { %2940 = vmatpush3.msra.mxu1 %v2254_v53 }
 0xbc0   : > { %2949 = vmatprep.subr.mxu1 %v3532_v19 }
 0xbc1   : > { %v3173_v55 = vpop.eup %3172 }
 0xbc2   : > { %v2098_v22 = vmul.f32 %v3173_v55, %v3165_v40 }
 0xbc4   : > { %2937 = vmatmul.mubr.msk.f32.vlgmr.msra.gmra.mrb[20].mxu0 %vm983_vm14, %v2098_v22 }
 0xbc5   : > { %v3175_v57 = vpop.eup %3174  ;;  %2945 = vmatpush3.msra.mxu0 %v2330_v56  ;;  %2946 = vmatprep.mubr.msk.f32.mxu0 %vm3534_vm9, %v3532_v19 }
 0xbc6   : > { %v3177_v58 = vpop.eup %3176  ;;  %v2099_v59 = vmul.f32 %v3175_v57, %v3169_v16 }
 0xbc7   : > { %v2100_v26 = vmul.f32 %v3177_v58, %v3167_v42 }
 0xbc8   : > { %2942 = vmatmul.mubr.msk.f32.vlgmr.msra.gmra.mrb[18].mxu1 %vm983_vm14, %v2099_v59 }
 0xbc9   : > { %2947 = vmatmul.mubr.msk.f32.vlgmr.msra.gmra.mrb[22].mxu0 %vm983_vm14, %v2100_v26  ;;  %2951 = vmatprep.mubr.msk.f32.mxu1 %vm3534_vm9, %v3532_v19 }
 0xc32   : > { %v2173_v60 = vpop.f32.mrb[16].mxu1 }
 0xc33   : > { %v2933_v27 = vpop.f32.mrb[17].mxu1 }
 0xc97   : > { %v2249_v28 = vpop.f32.mrb[20].mxu0 }
 0xc98   : > { %2406 = vrot.lane.b32.xlu1 %v2249_v28, %s3542_s2  ;;  %v2938_v61 = vpop.f32.mrb[21].mxu0 }
 0xc9b   : > { %v2325_v63 = vpop.f32.mrb[18].mxu1 }
 0xc9c   : > { %v2401_v0 = vpop.f32.mrb[22].mxu0  ;;  %2410 = vrot.lane.b32.xlu0 %v2325_v63, %s3535_s16  ;;  %v2943_v1 = vpop.f32.mrb[19].mxu1  ;;  %s4240_s16 = sld [smem:[#allocation26_spill]] }
 0xc9d   : > { %2414 = vrot.lane.b32.xlu1 %v2401_v0, %s3543_s20  ;;  %v2948_v2 = vpop.f32.mrb[23].mxu0 }
 0xca0   : > { %2424 = vperm.xlu0 %3145, %v3951_v54  }
 0xca2   : > { %s4156_s29 = scalar_lea.hbm %s4240_s16, %s2731_s22 }
 0xd0a   : > { %v2407_v19 = vpop.permute.xlu1 %2406 }
 0xd0b   : > { %v2417_v3 = vsel %vm983_vm14, %v2173_v60, %v2407_v19 }
 0xd0e   : > { %v2411_v4 = vpop.permute.xlu0 %2410 }
 0xd0f   : > { %v2418_v5 = vsel %vm701_vm10, %v2417_v3, %v2411_v4  ;;  %v2415_v6 = vpop.permute.xlu1 %2414 }
 0xd10   : > { %v2419_v7 = vsel %vm1650_vm0, %v2418_v5, %v2415_v6 }
 0xd11   : > { %v2420_v8 = vmax.f32 %v2419_v7, 0.0 }
 0xd13   : > { %v2421_v9 = vadd.f32 %v2420_v8, %v4067_v52 }
 0xd15   : > { %2950 = vmatpush3.xpose.msk.msra.mxu1 %vm703_vm11, %v2421_v9 }
 0xd18   : > { %2952 = vmatmul.mubr.msk.f32.vlgmr.msra.gmra.mrb[20].mxu1 %vm703_vm11, %v2422_v10 }
 0xd1f   : > { %v2425_v54 = vpop.permute.xlu0 %2424 }
 0xd20   : > { %v2430_v11 = vrot.slane %v2425_v54, %v723_v51 }
 0xdeb   : > { %v2503_v12 = vpop.f32.mrb[20].mxu1 }
 0xdec   : > { %v2504_v13 = vadd.f32 %v2503_v12, %v2430_v11  ;;  %v2953_v14 = vpop.f32.mrb[21].mxu1 }
 0xdee   : > { %2508 = vst.msk [vmem:[%s460_s21] sm:$0x1] %vm2507_vm1, %v2504_v13 }
 0xdef   : > { %3445 = shalt.err (!%p3442_p10)
}
 0xdf0   : > { %s3446_s26 = scalar_lea.hbm %s4156_s29, 16  ;;  %s3450_s20 = scalar_lea.hbm %s4240_s16, 32 }
 0xdf1   : > { %p3447_p11 = scmp.ne.s32.totalorder %s4156_s29, %s3446_s26  ;;  %p3451_p7 = scmp.lt.u32.totalorder %s4156_s29, %s4240_s16 }
 0xdf2   : > { %p3452_p5 = scmp.lt.u32.totalorder %s3450_s20, %s3446_s26  ;;  %p3454_p12 = scmp.lt.u32.totalorder %s3446_s26, %s4156_s29 }
 0xdf3   : > { %p3448_p0 = pnand %p3447_p11, %p4241_p13 }
 0xdf4   : > { %p3453_p9 = por %p3452_p5, %p3451_p7 }
 0xdf5   : > { %p3449_p6 = pneg %p3448_p0 }
 0xdf6   : > { %p3455_p1 = por %p3454_p12, %p3453_p9 }
 0xdf8   : > { %p3456_p3 = pnand %p3455_p1, %p3449_p6 }
 0xdfa   : > { %3459 = shalt.err (!%p3456_p3)
}
 0xdfb   : > { %3030 = dma.vmem_to_hbm [thread:$0]  (%p4241_p13), %s4158_s24, 16, %s4156_s29, %s2510_s23  }
 0xdfc PF: > { %s2534_s28 = sand.u32 1, %s3502_s30   ;;  %p4242_p2 = scmp.ne.s32.totalorder %s4227_s18, 0 }
 0xdfd   : > { %p4243_p8 = scmp.ge.s32.totalorder %s3514_s12, 2  ;;  %s2535_s14 = scalar_lea.sflag [#allocation4], %s2534_s28 }
 0xdff   : > { %p3062_p4 = pnand %p4243_p8, %p4242_p2 }
 0xe01   : > { %3497 = dma.done.wait (!%p3062_p4), %s2535_s14, 16  }
 0xe02   : > { %3499 = vsyncadd (!%p3062_p4), %s2535_s14, 4294967280  ;;  %p26_p10 = scmp.ge.s32.totalorder %s3823_s19, 4   ;;  %s4244_s30 = smov %s3506_s10 }
 0xe03   : > { %s4245_s10 = smov %s3510_s11  ;;  %s4246_s11 = smov %s3834_s1 }
 0xe04   : > { %s4247_s12 = smov %s3823_s19  ;;  %28 = sbr.rel (!%p26_p10) target bundleno = 13 (0xd), region = 139 }
 0xe0b   :  { %2539 = vsyncpa [#allocation3], 1 }
 0xe0c   :  { %2541 = vsyncpa [#allocation3 + $0x1], 1 }
 0xe0d   :  { %2542 = vsyncpa [#allocation6], 1 }
 0xe0e   :  { %2543 = vsyncpa [#allocation9], 1 }
 0xe0f   :  { %2544 = vsyncpa [#allocation12], 1 }
 0xe10   :  { %2545 = vsyncpa [#allocation15], 1 }
 0xe11   :  { %2546 = vsyncpa [#allocation4], 1 }
 0xe12   :  { %2548 = vsyncpa [#allocation4 + $0x1], 1 }

</bundles_post_ra>
